<compile_context>
chip_gen: v5e
topology: v5e:2x2
jax: 0.10.0
libtpu: 0.0.40
codegen_flags: <defaults>
</compile_context>

<pallas_src>
import functools

import jax
import jax.numpy as jnp
from jax.experimental import pallas as pl
from jax.experimental.pallas import tpu as pltpu

NEG_SLOPE = 0.01              # torch.nn.LeakyReLU default negative_slope
K1, K2, K3 = 5, 5, 2          # conv kernel sizes (== strides)
C1, C2, C3 = 32, 64, 128      # conv output channels
H4, H5 = 100, 2               # FC widths
OUT_LANES = 128               # lane-dense output width (cols 2..127 are zero)


# ----------------------------- fused Pallas kernel ---------------------------

def _convreg_fused_kernel(p1_ref, w1_ref, w2_ref, w3_ref, w4_ref, w5_ref,
                          b_ref, o_ref, s1, pool1, s2, pool2, s3,
                          *, B, L2, L3):
    """Whole ConvRegv2 forward on VMEM-resident data.

    p1_ref : (B*L1, K1*Cin) im2col patches of the input (k-major, c-minor).
    w*_ref : GEMM-layout weights; w4_ref rows are flatten-position-major.
    b_ref  : (8, 128) packed biases (row 0..4 = b1, b2, b3, b4, b5).
    s1/s2/s3, pool1/pool2: VMEM scratch; rows are batch-major, time-minor so
    pooling / im2col taps are plain strided sublane reads.
    """
    f32 = jnp.float32

    def lrelu(v):
        return jnp.maximum(v, NEG_SLOPE * v)

    # ---- block1: Conv1d(Cin->32, k=5, s=5) + LeakyReLU  -> s1: (B*L1, 32)
    s1[...] = lrelu(
        jnp.dot(p1_ref[...], w1_ref[...], preferred_element_type=f32)
        + b_ref[0:1, :C1])

    # ---- MaxPool1d(2): one dense pooled scratch, single stride-2 read pair.
    m1p = pool1.shape[0]                       # B * P1
    pool1[...] = jnp.maximum(s1[pl.ds(0, m1p, stride=2), :],
                             s1[pl.ds(1, m1p, stride=2), :])

    # ---- block2: Conv1d(32->64, k=5, s=5) as K2 per-tap accumulating matmuls.
    # Out row m = b*L2 + t, tap k  <-  pool1 row 5m + k.
    m2 = B * L2
    y2 = jnp.dot(pool1[pl.ds(0, m2, stride=K2), :], w2_ref[0:C1, :],
                 preferred_element_type=f32)
    for k in range(1, K2):
        y2 += jnp.dot(pool1[pl.ds(k, m2, stride=K2), :],
                      w2_ref[k * C1:(k + 1) * C1, :],
                      preferred_element_type=f32)
    s2[...] = lrelu(y2 + b_ref[1:2, :C2])      # (B*L2, 64)

    # ---- MaxPool1d(2) again.
    m2p = pool2.shape[0]                       # B * P2
    pool2[...] = jnp.maximum(s2[pl.ds(0, m2p, stride=2), :],
                             s2[pl.ds(1, m2p, stride=2), :])

    # ---- block3: Conv1d(64->128, k=2, s=2) as K3 per-tap matmuls.
    # Out row m = b*L3 + v, tap k  <-  pool2 row 2m + k.
    m3 = B * L3
    y3 = jnp.dot(pool2[pl.ds(0, m3, stride=K3), :], w3_ref[0:C2, :],
                 preferred_element_type=f32)
    for k in range(1, K3):
        y3 += jnp.dot(pool2[pl.ds(k, m3, stride=K3), :],
                      w3_ref[k * C2:(k + 1) * C2, :],
                      preferred_element_type=f32)
    s3[...] = lrelu(y3 + b_ref[2:3, :C3])      # (B*L3, 128)

    # ---- block4: Linear(640->100) as per-flatten-position accumulation.
    # flat[b, :] position v contributes s3 row b*L3 + v  (w4_ref is v-major).
    h = jnp.dot(s3[pl.ds(0, B, stride=L3), :], w4_ref[0:C3, :],
                preferred_element_type=f32)
    for v in range(1, L3):
        h += jnp.dot(s3[pl.ds(v, B, stride=L3), :],
                     w4_ref[v * C3:(v + 1) * C3, :],
                     preferred_element_type=f32)
    h = lrelu(h + b_ref[3:4, :H4])             # (B, 100)

    # ---- Linear(100->2) into a lane-dense (B, 128) slab (cols 2.. are zero).
    o_ref[...] = (jnp.dot(h, w5_ref[...], preferred_element_type=f32)
                  + b_ref[4:5, :]).astype(o_ref.dtype)


def _full2d_spec(shape):
    return pl.BlockSpec(shape, lambda i: (0, 0))


# ------------------------------- model wrapper -------------------------------

@jax.jit
def conv_reg_v2_forward(x_ncl, params):
    """Forward pass of ConvRegv2. x_ncl: (B, C_in, L) float32 (PyTorch NCL)."""
    B, Cin, L = x_ncl.shape

    # stride == kernel_size patchify convs => simple divisibility requirements
    assert L % K1 == 0, "L must be divisible by 5"
    L1 = L // K1                       # conv1 output length (200)
    assert L1 % 2 == 0                 # MaxPool1d(2)
    P1 = L1 // 2                       # 100
    assert P1 % K2 == 0
    L2 = P1 // K2                      # 20
    assert L2 % 2 == 0
    P2 = L2 // 2                       # 10
    assert P2 % K3 == 0
    L3 = P2 // K3                      # 5
    assert C3 * L3 == params["w4"].shape[1], "flatten size mismatch"

    # --- wrapper glue: im2col of the raw input (one small XLA copy, ~32 KB)
    x_nlc = jnp.transpose(x_ncl, (0, 2, 1))                 # (B, L, Cin)
    patches1 = x_nlc.reshape(B * L1, K1 * Cin)              # k-major, c-minor

    # --- weight prep into GEMM layouts (tiny, trace-time)
    # w*m[k*C + c, o] == w*[o, c, k]  (matches k-major, c-minor patch order)
    w1m = jnp.transpose(params["w1"], (2, 1, 0)).reshape(K1 * Cin, C1)
    w2m = jnp.transpose(params["w2"], (2, 1, 0)).reshape(K2 * C1, C2)
    w3m = jnp.transpose(params["w3"], (2, 1, 0)).reshape(K3 * C2, C3)
    # fold PyTorch Flatten order (o*L3 + v) into fc4 weight rows (v*128 + o)
    w4r = jnp.transpose(params["w4"].reshape(H4, C3, L3),
                        (2, 1, 0)).reshape(C3 * L3, H4)
    # fc5 weight zero-padded to 128 lanes -> lane-dense kernel output
    w5p = jnp.zeros((H4, OUT_LANES), jnp.float32).at[:, :H5].set(params["w5"].T)

    # --- all five biases packed into one (8, 128) buffer (one DMA, not five)
    biases = jnp.zeros((8, OUT_LANES), jnp.float32)
    biases = biases.at[0, :C1].set(params["b1"])
    biases = biases.at[1, :C2].set(params["b2"])
    biases = biases.at[2, :C3].set(params["b3"])
    biases = biases.at[3, :H4].set(params["b4"])
    biases = biases.at[4, :H5].set(params["b5"])

    kernel = functools.partial(_convreg_fused_kernel, B=B, L2=L2, L3=L3)
    args = (patches1, w1m, w2m, w3m, w4r, w5p, biases)

    out = pl.pallas_call(
        kernel,
        out_shape=jax.ShapeDtypeStruct((B, OUT_LANES), jnp.float32),
        grid=(1,),
        in_specs=[_full2d_spec(a.shape) for a in args],
        out_specs=_full2d_spec((B, OUT_LANES)),
        scratch_shapes=[
            pltpu.VMEM((B * L1, C1), jnp.float32),   # s1:   conv1 output
            pltpu.VMEM((B * P1, C1), jnp.float32),   # pool1 (dense pooled)
            pltpu.VMEM((B * L2, C2), jnp.float32),   # s2:   conv2 output
            pltpu.VMEM((B * P2, C2), jnp.float32),   # pool2 (dense pooled)
            pltpu.VMEM((B * L3, C3), jnp.float32),   # s3:   conv3 output
        ],
        compiler_params=pltpu.CompilerParams(
            dimension_semantics=("arbitrary",)),
    )(*args)

    # .unsqueeze(dim=1) -> (B, 1, 2); drop the lane padding.
    return out[:, :H5].reshape(B, 1, H5)


# ----------------------------- pure-JAX reference ----------------------------

def reference_forward(x, p):
    def conv1d(v, w, b, stride):
        y = jax.lax.conv_general_dilated(
            v, w, window_strides=(stride,), padding="VALID",
            dimension_numbers=("NCH", "OIH", "NCH"))
        return y + b[None, :, None]

    def lrelu(v):
        return jnp.where(v >= 0, v, NEG_SLOPE * v)

    def mp2(v):
        B, C, L = v.shape
        return jnp.max(v.reshape(B, C, L // 2, 2), axis=-1)

    y = mp2(lrelu(conv1d(x, p["w1"], p["b1"], 5)))
    y = mp2(lrelu(conv1d(y, p["w2"], p["b2"], 5)))
    y = lrelu(conv1d(y, p["w3"], p["b3"], 2))
    y = y.reshape(y.shape[0], -1)
    y = lrelu(y @ p["w4"].T + p["b4"])
    y = y @ p["w5"].T + p["b5"]
    return y[:, None, :]


# ----------------------------------- main ------------------------------------

if __name__ == "__main__":
    key = jax.random.PRNGKey(0)
    # Smallest shapes consistent with the module: flatten must yield 128*5=640,
    # which requires input length L = 1000 (with batch=2, in_channels=4).
    B, Cin, L = 2, 4, 1000
    ks = jax.random.split(key, 11)
    x = jax.random.normal(ks[0], (B, Cin, L), dtype=jnp.float32)

    params = {
        "w1": 0.10 * jax.random.normal(ks[1], (C1, Cin, K1), dtype=jnp.float32),
        "b1": 0.10 * jax.random.normal(ks[2], (C1,), dtype=jnp.float32),
        "w2": 0.10 * jax.random.normal(ks[3], (C2, C1, K2), dtype=jnp.float32),
        "b2": 0.10 * jax.random.normal(ks[4], (C2,), dtype=jnp.float32),
        "w3": 0.10 * jax.random.normal(ks[5], (C3, C2, K3), dtype=jnp.float32),
        "b3": 0.10 * jax.random.normal(ks[6], (C3,), dtype=jnp.float32),
        "w4": 0.05 * jax.random.normal(ks[7], (H4, C3 * 5), dtype=jnp.float32),
        "b4": 0.05 * jax.random.normal(ks[8], (H4,), dtype=jnp.float32),
        "w5": 0.05 * jax.random.normal(ks[9], (H5, H4), dtype=jnp.float32),
        "b5": 0.05 * jax.random.normal(ks[10], (H5,), dtype=jnp.float32),
    }

    out = jax.block_until_ready(conv_reg_v2_forward(x, params))
    ref = jax.block_until_ready(reference_forward(x, params))

    assert out.shape == (B, 1, H5), out.shape
    assert jnp.allclose(out, ref, rtol=1e-3, atol=1e-3), (out, ref)
    print("KERNEL_OK")
</pallas_src>

<mosaic_0001>
module attributes {stable_mosaic.version = 11 : i64} {
  func.func @_convreg_fused_kernel(%arg0: i32, %arg1: memref<400x20xf32, #tpu.memory_space<vmem>>, %arg2: memref<20x32xf32, #tpu.memory_space<vmem>>, %arg3: memref<160x64xf32, #tpu.memory_space<vmem>>, %arg4: memref<128x128xf32, #tpu.memory_space<vmem>>, %arg5: memref<640x100xf32, #tpu.memory_space<vmem>>, %arg6: memref<100x128xf32, #tpu.memory_space<vmem>>, %arg7: memref<8x128xf32, #tpu.memory_space<vmem>>, %arg8: memref<2x128xf32, #tpu.memory_space<vmem>>, %arg9: memref<400x32xf32, #tpu.memory_space<vmem>>, %arg10: memref<200x32xf32, #tpu.memory_space<vmem>>, %arg11: memref<40x64xf32, #tpu.memory_space<vmem>>, %arg12: memref<20x64xf32, #tpu.memory_space<vmem>>, %arg13: memref<10x128xf32, #tpu.memory_space<vmem>>) attributes {dimension_semantics = [#tpu.dimension_semantics<arbitrary>], iteration_bounds = array<i64: 1>, scalar_prefetch = 0 : i64, scratch_operands = 5 : i64, tpu.core_type = #tpu.core_type<tc>, window_params = [{pipeline_mode = #tpu.pipeline_mode<synchronous>, transform_indices = @transform_0, window_bounds = array<i64: 400, 20>}, {pipeline_mode = #tpu.pipeline_mode<synchronous>, transform_indices = @transform_1, window_bounds = array<i64: 20, 32>}, {pipeline_mode = #tpu.pipeline_mode<synchronous>, transform_indices = @transform_2, window_bounds = array<i64: 160, 64>}, {pipeline_mode = #tpu.pipeline_mode<synchronous>, transform_indices = @transform_3, window_bounds = array<i64: 128, 128>}, {pipeline_mode = #tpu.pipeline_mode<synchronous>, transform_indices = @transform_4, window_bounds = array<i64: 640, 100>}, {pipeline_mode = #tpu.pipeline_mode<synchronous>, transform_indices = @transform_5, window_bounds = array<i64: 100, 128>}, {pipeline_mode = #tpu.pipeline_mode<synchronous>, transform_indices = @transform_6, window_bounds = array<i64: 8, 128>}, {pipeline_mode = #tpu.pipeline_mode<synchronous>, transform_indices = @transform_7, window_bounds = array<i64: 2, 128>}]} {
    %c0 = arith.constant 0 : index
    %c0_0 = arith.constant 0 : index
    %0 = vector.load %arg1[%c0, %c0_0] : memref<400x20xf32, #tpu.memory_space<vmem>>, vector<400x20xf32>
    %c0_1 = arith.constant 0 : index
    %c0_2 = arith.constant 0 : index
    %1 = vector.load %arg2[%c0_1, %c0_2] : memref<20x32xf32, #tpu.memory_space<vmem>>, vector<20x32xf32>
    %cst = arith.constant dense<0.000000e+00> : vector<400x32xf32>
    %2 = tpu.matmul %0, %1, %cst {dimension_numbers = #tpu.dot_dimension_numbers<[1], [0], [0], [1], [0, 0, 1, 1], [], []>} : vector<400x20xf32>, vector<20x32xf32>, vector<400x32xf32> -> vector<400x32xf32>
    %c0_3 = arith.constant 0 : index
    %c0_4 = arith.constant 0 : index
    %3 = vector.load %arg7[%c0_3, %c0_4] : memref<8x128xf32, #tpu.memory_space<vmem>>, vector<1x32xf32>
    %4 = vector.broadcast %3 : vector<1x32xf32> to vector<400x32xf32>
    %5 = arith.addf %2, %4 : vector<400x32xf32>
    %cst_5 = arith.constant 0.00999999977 : f32
    %6 = vector.broadcast %cst_5 : f32 to vector<400x32xf32>
    %7 = arith.mulf %6, %5 : vector<400x32xf32>
    %8 = arith.maximumf %5, %7 : vector<400x32xf32>
    %c0_6 = arith.constant 0 : index
    %c0_7 = arith.constant 0 : index
    %9 = vector.load %arg9[%c0_6, %c0_7] : memref<400x32xf32, #tpu.memory_space<vmem>>, vector<400x32xf32>
    tpu.vector_store %arg9[%c0_6, %c0_7], %8 {strides = array<i32>} : memref<400x32xf32, #tpu.memory_space<vmem>>, vector<400x32xf32>,
    %c0_8 = arith.constant 0 : index
    %c0_9 = arith.constant 0 : index
    %10 = tpu.strided_load %arg9[%c0_8, %c0_9] {strides = array<i32: 2, 1>} : memref<400x32xf32, #tpu.memory_space<vmem>>, vector<200x32xf32>
    %c1 = arith.constant 1 : index
    %c0_10 = arith.constant 0 : index
    %11 = tpu.strided_load %arg9[%c1, %c0_10] {strides = array<i32: 2, 1>} : memref<400x32xf32, #tpu.memory_space<vmem>>, vector<200x32xf32>
    %12 = arith.maximumf %10, %11 : vector<200x32xf32>
    %c0_11 = arith.constant 0 : index
    %c0_12 = arith.constant 0 : index
    %13 = vector.load %arg10[%c0_11, %c0_12] : memref<200x32xf32, #tpu.memory_space<vmem>>, vector<200x32xf32>
    tpu.vector_store %arg10[%c0_11, %c0_12], %12 {strides = array<i32>} : memref<200x32xf32, #tpu.memory_space<vmem>>, vector<200x32xf32>,
    %c0_13 = arith.constant 0 : index
    %c0_14 = arith.constant 0 : index
    %14 = tpu.strided_load %arg10[%c0_13, %c0_14] {strides = array<i32: 5, 1>} : memref<200x32xf32, #tpu.memory_space<vmem>>, vector<40x32xf32>
    %c0_15 = arith.constant 0 : index
    %c0_16 = arith.constant 0 : index
    %15 = vector.load %arg3[%c0_15, %c0_16] : memref<160x64xf32, #tpu.memory_space<vmem>>, vector<32x64xf32>
    %cst_17 = arith.constant dense<0.000000e+00> : vector<40x64xf32>
    %16 = tpu.matmul %14, %15, %cst_17 {dimension_numbers = #tpu.dot_dimension_numbers<[1], [0], [0], [1], [0, 0, 1, 1], [], []>} : vector<40x32xf32>, vector<32x64xf32>, vector<40x64xf32> -> vector<40x64xf32>
    %c1_18 = arith.constant 1 : index
    %c0_19 = arith.constant 0 : index
    %17 = tpu.strided_load %arg10[%c1_18, %c0_19] {strides = array<i32: 5, 1>} : memref<200x32xf32, #tpu.memory_space<vmem>>, vector<40x32xf32>
    %c32 = arith.constant 32 : index
    %c0_20 = arith.constant 0 : index
    %18 = vector.load %arg3[%c32, %c0_20] : memref<160x64xf32, #tpu.memory_space<vmem>>, vector<32x64xf32>
    %cst_21 = arith.constant dense<0.000000e+00> : vector<40x64xf32>
    %19 = tpu.matmul %17, %18, %cst_21 {dimension_numbers = #tpu.dot_dimension_numbers<[1], [0], [0], [1], [0, 0, 1, 1], [], []>} : vector<40x32xf32>, vector<32x64xf32>, vector<40x64xf32> -> vector<40x64xf32>
    %20 = arith.addf %16, %19 : vector<40x64xf32>
    %c2 = arith.constant 2 : index
    %c0_22 = arith.constant 0 : index
    %21 = tpu.strided_load %arg10[%c2, %c0_22] {strides = array<i32: 5, 1>} : memref<200x32xf32, #tpu.memory_space<vmem>>, vector<40x32xf32>
    %c64 = arith.constant 64 : index
    %c0_23 = arith.constant 0 : index
    %22 = vector.load %arg3[%c64, %c0_23] : memref<160x64xf32, #tpu.memory_space<vmem>>, vector<32x64xf32>
    %cst_24 = arith.constant dense<0.000000e+00> : vector<40x64xf32>
    %23 = tpu.matmul %21, %22, %cst_24 {dimension_numbers = #tpu.dot_dimension_numbers<[1], [0], [0], [1], [0, 0, 1, 1], [], []>} : vector<40x32xf32>, vector<32x64xf32>, vector<40x64xf32> -> vector<40x64xf32>
    %24 = arith.addf %20, %23 : vector<40x64xf32>
    %c3 = arith.constant 3 : index
    %c0_25 = arith.constant 0 : index
    %25 = tpu.strided_load %arg10[%c3, %c0_25] {strides = array<i32: 5, 1>} : memref<200x32xf32, #tpu.memory_space<vmem>>, vector<40x32xf32>
    %c96 = arith.constant 96 : index
    %c0_26 = arith.constant 0 : index
    %26 = vector.load %arg3[%c96, %c0_26] : memref<160x64xf32, #tpu.memory_space<vmem>>, vector<32x64xf32>
    %cst_27 = arith.constant dense<0.000000e+00> : vector<40x64xf32>
    %27 = tpu.matmul %25, %26, %cst_27 {dimension_numbers = #tpu.dot_dimension_numbers<[1], [0], [0], [1], [0, 0, 1, 1], [], []>} : vector<40x32xf32>, vector<32x64xf32>, vector<40x64xf32> -> vector<40x64xf32>
    %28 = arith.addf %24, %27 : vector<40x64xf32>
    %c4 = arith.constant 4 : index
    %c0_28 = arith.constant 0 : index
    %29 = tpu.strided_load %arg10[%c4, %c0_28] {strides = array<i32: 5, 1>} : memref<200x32xf32, #tpu.memory_space<vmem>>, vector<40x32xf32>
    %c128 = arith.constant 128 : index
    %c0_29 = arith.constant 0 : index
    %30 = vector.load %arg3[%c128, %c0_29] : memref<160x64xf32, #tpu.memory_space<vmem>>, vector<32x64xf32>
    %cst_30 = arith.constant dense<0.000000e+00> : vector<40x64xf32>
    %31 = tpu.matmul %29, %30, %cst_30 {dimension_numbers = #tpu.dot_dimension_numbers<[1], [0], [0], [1], [0, 0, 1, 1], [], []>} : vector<40x32xf32>, vector<32x64xf32>, vector<40x64xf32> -> vector<40x64xf32>
    %32 = arith.addf %28, %31 : vector<40x64xf32>
    %c1_31 = arith.constant 1 : index
    %c0_32 = arith.constant 0 : index
    %33 = vector.load %arg7[%c1_31, %c0_32] : memref<8x128xf32, #tpu.memory_space<vmem>>, vector<1x64xf32>
    %34 = vector.broadcast %33 : vector<1x64xf32> to vector<40x64xf32>
    %35 = arith.addf %32, %34 : vector<40x64xf32>
    %cst_33 = arith.constant 0.00999999977 : f32
    %36 = vector.broadcast %cst_33 : f32 to vector<40x64xf32>
    %37 = arith.mulf %36, %35 : vector<40x64xf32>
    %38 = arith.maximumf %35, %37 : vector<40x64xf32>
    %c0_34 = arith.constant 0 : index
    %c0_35 = arith.constant 0 : index
    %39 = vector.load %arg11[%c0_34, %c0_35] : memref<40x64xf32, #tpu.memory_space<vmem>>, vector<40x64xf32>
    tpu.vector_store %arg11[%c0_34, %c0_35], %38 {strides = array<i32>} : memref<40x64xf32, #tpu.memory_space<vmem>>, vector<40x64xf32>,
    %c0_36 = arith.constant 0 : index
    %c0_37 = arith.constant 0 : index
    %40 = tpu.strided_load %arg11[%c0_36, %c0_37] {strides = array<i32: 2, 1>} : memref<40x64xf32, #tpu.memory_space<vmem>>, vector<20x64xf32>
    %c1_38 = arith.constant 1 : index
    %c0_39 = arith.constant 0 : index
    %41 = tpu.strided_load %arg11[%c1_38, %c0_39] {strides = array<i32: 2, 1>} : memref<40x64xf32, #tpu.memory_space<vmem>>, vector<20x64xf32>
    %42 = arith.maximumf %40, %41 : vector<20x64xf32>
    %c0_40 = arith.constant 0 : index
    %c0_41 = arith.constant 0 : index
    %43 = vector.load %arg12[%c0_40, %c0_41] : memref<20x64xf32, #tpu.memory_space<vmem>>, vector<20x64xf32>
    tpu.vector_store %arg12[%c0_40, %c0_41], %42 {strides = array<i32>} : memref<20x64xf32, #tpu.memory_space<vmem>>, vector<20x64xf32>,
    %c0_42 = arith.constant 0 : index
    %c0_43 = arith.constant 0 : index
    %44 = tpu.strided_load %arg12[%c0_42, %c0_43] {strides = array<i32: 2, 1>} : memref<20x64xf32, #tpu.memory_space<vmem>>, vector<10x64xf32>
    %c0_44 = arith.constant 0 : index
    %c0_45 = arith.constant 0 : index
    %45 = vector.load %arg4[%c0_44, %c0_45] : memref<128x128xf32, #tpu.memory_space<vmem>>, vector<64x128xf32>
    %cst_46 = arith.constant dense<0.000000e+00> : vector<10x128xf32>
    %46 = tpu.matmul %44, %45, %cst_46 {dimension_numbers = #tpu.dot_dimension_numbers<[1], [0], [0], [1], [0, 0, 1, 1], [], []>} : vector<10x64xf32>, vector<64x128xf32>, vector<10x128xf32> -> vector<10x128xf32>
    %c1_47 = arith.constant 1 : index
    %c0_48 = arith.constant 0 : index
    %47 = tpu.strided_load %arg12[%c1_47, %c0_48] {strides = array<i32: 2, 1>} : memref<20x64xf32, #tpu.memory_space<vmem>>, vector<10x64xf32>
    %c64_49 = arith.constant 64 : index
    %c0_50 = arith.constant 0 : index
    %48 = vector.load %arg4[%c64_49, %c0_50] : memref<128x128xf32, #tpu.memory_space<vmem>>, vector<64x128xf32>
    %cst_51 = arith.constant dense<0.000000e+00> : vector<10x128xf32>
    %49 = tpu.matmul %47, %48, %cst_51 {dimension_numbers = #tpu.dot_dimension_numbers<[1], [0], [0], [1], [0, 0, 1, 1], [], []>} : vector<10x64xf32>, vector<64x128xf32>, vector<10x128xf32> -> vector<10x128xf32>
    %50 = arith.addf %46, %49 : vector<10x128xf32>
    %c2_52 = arith.constant 2 : index
    %c0_53 = arith.constant 0 : index
    %51 = vector.load %arg7[%c2_52, %c0_53] : memref<8x128xf32, #tpu.memory_space<vmem>>, vector<1x128xf32>
    %52 = vector.broadcast %51 : vector<1x128xf32> to vector<10x128xf32>
    %53 = arith.addf %50, %52 : vector<10x128xf32>
    %cst_54 = arith.constant 0.00999999977 : f32
    %54 = vector.broadcast %cst_54 : f32 to vector<10x128xf32>
    %55 = arith.mulf %54, %53 : vector<10x128xf32>
    %56 = arith.maximumf %53, %55 : vector<10x128xf32>
    %c0_55 = arith.constant 0 : index
    %c0_56 = arith.constant 0 : index
    %57 = vector.load %arg13[%c0_55, %c0_56] : memref<10x128xf32, #tpu.memory_space<vmem>>, vector<10x128xf32>
    tpu.vector_store %arg13[%c0_55, %c0_56], %56 {strides = array<i32>} : memref<10x128xf32, #tpu.memory_space<vmem>>, vector<10x128xf32>,
    %c0_57 = arith.constant 0 : index
    %c0_58 = arith.constant 0 : index
    %58 = tpu.strided_load %arg13[%c0_57, %c0_58] {strides = array<i32: 5, 1>} : memref<10x128xf32, #tpu.memory_space<vmem>>, vector<2x128xf32>
    %c0_59 = arith.constant 0 : index
    %c0_60 = arith.constant 0 : index
    %59 = vector.load %arg5[%c0_59, %c0_60] : memref<640x100xf32, #tpu.memory_space<vmem>>, vector<128x100xf32>
    %cst_61 = arith.constant dense<0.000000e+00> : vector<2x100xf32>
    %60 = tpu.matmul %58, %59, %cst_61 {dimension_numbers = #tpu.dot_dimension_numbers<[1], [0], [0], [1], [0, 0, 1, 1], [], []>} : vector<2x128xf32>, vector<128x100xf32>, vector<2x100xf32> -> vector<2x100xf32>
    %c1_62 = arith.constant 1 : index
    %c0_63 = arith.constant 0 : index
    %61 = tpu.strided_load %arg13[%c1_62, %c0_63] {strides = array<i32: 5, 1>} : memref<10x128xf32, #tpu.memory_space<vmem>>, vector<2x128xf32>
    %c128_64 = arith.constant 128 : index
    %c0_65 = arith.constant 0 : index
    %62 = vector.load %arg5[%c128_64, %c0_65] : memref<640x100xf32, #tpu.memory_space<vmem>>, vector<128x100xf32>
    %cst_66 = arith.constant dense<0.000000e+00> : vector<2x100xf32>
    %63 = tpu.matmul %61, %62, %cst_66 {dimension_numbers = #tpu.dot_dimension_numbers<[1], [0], [0], [1], [0, 0, 1, 1], [], []>} : vector<2x128xf32>, vector<128x100xf32>, vector<2x100xf32> -> vector<2x100xf32>
    %64 = arith.addf %60, %63 : vector<2x100xf32>
    %c2_67 = arith.constant 2 : index
    %c0_68 = arith.constant 0 : index
    %65 = tpu.strided_load %arg13[%c2_67, %c0_68] {strides = array<i32: 5, 1>} : memref<10x128xf32, #tpu.memory_space<vmem>>, vector<2x128xf32>
    %c256 = arith.constant 256 : index
    %c0_69 = arith.constant 0 : index
    %66 = vector.load %arg5[%c256, %c0_69] : memref<640x100xf32, #tpu.memory_space<vmem>>, vector<128x100xf32>
    %cst_70 = arith.constant dense<0.000000e+00> : vector<2x100xf32>
    %67 = tpu.matmul %65, %66, %cst_70 {dimension_numbers = #tpu.dot_dimension_numbers<[1], [0], [0], [1], [0, 0, 1, 1], [], []>} : vector<2x128xf32>, vector<128x100xf32>, vector<2x100xf32> -> vector<2x100xf32>
    %68 = arith.addf %64, %67 : vector<2x100xf32>
    %c3_71 = arith.constant 3 : index
    %c0_72 = arith.constant 0 : index
    %69 = tpu.strided_load %arg13[%c3_71, %c0_72] {strides = array<i32: 5, 1>} : memref<10x128xf32, #tpu.memory_space<vmem>>, vector<2x128xf32>
    %c384 = arith.constant 384 : index
    %c0_73 = arith.constant 0 : index
    %70 = vector.load %arg5[%c384, %c0_73] : memref<640x100xf32, #tpu.memory_space<vmem>>, vector<128x100xf32>
    %cst_74 = arith.constant dense<0.000000e+00> : vector<2x100xf32>
    %71 = tpu.matmul %69, %70, %cst_74 {dimension_numbers = #tpu.dot_dimension_numbers<[1], [0], [0], [1], [0, 0, 1, 1], [], []>} : vector<2x128xf32>, vector<128x100xf32>, vector<2x100xf32> -> vector<2x100xf32>
    %72 = arith.addf %68, %71 : vector<2x100xf32>
    %c4_75 = arith.constant 4 : index
    %c0_76 = arith.constant 0 : index
    %73 = tpu.strided_load %arg13[%c4_75, %c0_76] {strides = array<i32: 5, 1>} : memref<10x128xf32, #tpu.memory_space<vmem>>, vector<2x128xf32>
    %c512 = arith.constant 512 : index
    %c0_77 = arith.constant 0 : index
    %74 = vector.load %arg5[%c512, %c0_77] : memref<640x100xf32, #tpu.memory_space<vmem>>, vector<128x100xf32>
    %cst_78 = arith.constant dense<0.000000e+00> : vector<2x100xf32>
    %75 = tpu.matmul %73, %74, %cst_78 {dimension_numbers = #tpu.dot_dimension_numbers<[1], [0], [0], [1], [0, 0, 1, 1], [], []>} : vector<2x128xf32>, vector<128x100xf32>, vector<2x100xf32> -> vector<2x100xf32>
    %76 = arith.addf %72, %75 : vector<2x100xf32>
    %c3_79 = arith.constant 3 : index
    %c0_80 = arith.constant 0 : index
    %77 = vector.load %arg7[%c3_79, %c0_80] : memref<8x128xf32, #tpu.memory_space<vmem>>, vector<1x100xf32>
    %78 = vector.broadcast %77 : vector<1x100xf32> to vector<2x100xf32>
    %79 = arith.addf %76, %78 : vector<2x100xf32>
    %cst_81 = arith.constant 0.00999999977 : f32
    %80 = vector.broadcast %cst_81 : f32 to vector<2x100xf32>
    %81 = arith.mulf %80, %79 : vector<2x100xf32>
    %82 = arith.maximumf %79, %81 : vector<2x100xf32>
    %c0_82 = arith.constant 0 : index
    %c0_83 = arith.constant 0 : index
    %83 = vector.load %arg6[%c0_82, %c0_83] : memref<100x128xf32, #tpu.memory_space<vmem>>, vector<100x128xf32>
    %cst_84 = arith.constant dense<0.000000e+00> : vector<2x128xf32>
    %84 = tpu.matmul %82, %83, %cst_84 {dimension_numbers = #tpu.dot_dimension_numbers<[1], [0], [0], [1], [0, 0, 1, 1], [], []>} : vector<2x100xf32>, vector<100x128xf32>, vector<2x128xf32> -> vector<2x128xf32>
    %c4_85 = arith.constant 4 : index
    %c0_86 = arith.constant 0 : index
    %85 = vector.load %arg7[%c4_85, %c0_86] : memref<8x128xf32, #tpu.memory_space<vmem>>, vector<1x128xf32>
    %86 = vector.broadcast %85 : vector<1x128xf32> to vector<2x128xf32>
    %87 = arith.addf %84, %86 : vector<2x128xf32>
    %c0_87 = arith.constant 0 : index
    %c0_88 = arith.constant 0 : index
    %88 = vector.load %arg8[%c0_87, %c0_88] : memref<2x128xf32, #tpu.memory_space<vmem>>, vector<2x128xf32>
    tpu.vector_store %arg8[%c0_87, %c0_88], %87 {strides = array<i32>} : memref<2x128xf32, #tpu.memory_space<vmem>>, vector<2x128xf32>,
    return
  }
  func.func @transform_0(%arg0: i32) -> (i32, i32) {
    %c0_i32 = arith.constant 0 : i32
    %c0_i32_0 = arith.constant 0 : i32
    %c0_i32_1 = arith.constant 0 : i32
    return %c0_i32, %c0_i32_0 : i32, i32
  }
  func.func @transform_1(%arg0: i32) -> (i32, i32) {
    %c0_i32 = arith.constant 0 : i32
    %c0_i32_0 = arith.constant 0 : i32
    %c0_i32_1 = arith.constant 0 : i32
    return %c0_i32, %c0_i32_0 : i32, i32
  }
  func.func @transform_2(%arg0: i32) -> (i32, i32) {
    %c0_i32 = arith.constant 0 : i32
    %c0_i32_0 = arith.constant 0 : i32
    %c0_i32_1 = arith.constant 0 : i32
    return %c0_i32, %c0_i32_0 : i32, i32
  }
  func.func @transform_3(%arg0: i32) -> (i32, i32) {
    %c0_i32 = arith.constant 0 : i32
    %c0_i32_0 = arith.constant 0 : i32
    %c0_i32_1 = arith.constant 0 : i32
    return %c0_i32, %c0_i32_0 : i32, i32
  }
  func.func @transform_4(%arg0: i32) -> (i32, i32) {
    %c0_i32 = arith.constant 0 : i32
    %c0_i32_0 = arith.constant 0 : i32
    %c0_i32_1 = arith.constant 0 : i32
    return %c0_i32, %c0_i32_0 : i32, i32
  }
  func.func @transform_5(%arg0: i32) -> (i32, i32) {
    %c0_i32 = arith.constant 0 : i32
    %c0_i32_0 = arith.constant 0 : i32
    %c0_i32_1 = arith.constant 0 : i32
    return %c0_i32, %c0_i32_0 : i32, i32
  }
  func.func @transform_6(%arg0: i32) -> (i32, i32) {
    %c0_i32 = arith.constant 0 : i32
    %c0_i32_0 = arith.constant 0 : i32
    %c0_i32_1 = arith.constant 0 : i32
    return %c0_i32, %c0_i32_0 : i32, i32
  }
  func.func @transform_7(%arg0: i32) -> (i32, i32) {
    %c0_i32 = arith.constant 0 : i32
    %c0_i32_0 = arith.constant 0 : i32
    %c0_i32_1 = arith.constant 0 : i32
    return %c0_i32, %c0_i32_0 : i32, i32
  }
}

</mosaic_0001>

<bundles_post_ra>
// kernel: conv_reg_v2_forward.1
= control target key start
LH: loop header
LB: loop body
LE: loop exit
PB: predicated region body
PF: predicated region fallthrough
CT: control target
= control target key end

     0   :  { %vm233_vm0 = vcmask 1043456   ;;  %vm82_vm1 = vcmask 162816   ;;  %s2370_s0 = inlined_call_operand.vmem [shape: f32[400,20], index: 0, kind: input, shape index: {}]   ;;  %s2371_s1 = inlined_call_operand.vmem [shape: f32[20,32], index: 1, kind: input, shape index: {}]   ;;  %s2372_s2 = inlined_call_operand.vmem [shape: f32[160,64], index: 2, kind: input, shape index: {}]   ;;  %s2373_s3 = inlined_call_operand.vmem [shape: f32[128,128], index: 3, kind: input, shape index: {}]   ;;  %s2374_s4 = inlined_call_operand.vmem [shape: f32[640,100], index: 4, kind: input, shape index: {}]   ;;  %s2375_s5 = inlined_call_operand.vmem [shape: f32[100,128], index: 5, kind: input, shape index: {}]   ;;  %s2376_s6 = inlined_call_operand.vmem [shape: f32[8,128], index: 6, kind: input, shape index: {}]   ;;  %s2377_s7 = inlined_call_operand.hbm [shape: f32[2,128], index: 7, kind: output, shape index: {}]  }
   0x1   :  { %v79_v0 = vld [vmem:[%s2371_s1 + $0x10] sm:$0xf]  ;;  %v78_v1 = vld [vmem:[%s2371_s1 + $0x8] sm:$0xff]  ;;  %v77_v2 = vld [vmem:[%s2371_s1] sm:$0xff] }
   0x2   :  { %1411 = vmatpush.msk.msra.mxu0 %vm233_vm0, %v79_v0  ;;  %1493 = vmatpush.msk.msra.mxu1 %vm233_vm0, %v79_v0  ;;  %v27_v3 = vld [vmem:[%s2370_s0] sm:$0xff] }
   0x3   :  { %1494 = vmatpush.msk.msra.mxu2 %vm233_vm0, %v79_v0  ;;  %1495 = vmatpush.msk.msra.mxu3 %vm233_vm0, %v79_v0 }
   0x4   :  { %251 = vmatpush.msra.mxu0 %v78_v1  ;;  %1496 = vmatpush.msra.mxu1 %v78_v1 }
   0x5   :  { %1497 = vmatpush.msra.mxu2 %v78_v1  ;;  %1498 = vmatpush.msra.mxu3 %v78_v1 }
   0x6   :  { %12 = vsyncpa [#allocation8], 0  ;;  %252 = vmatpush.msra.mxu0 %v77_v2  ;;  %1499 = vmatpush.msra.mxu1 %v77_v2  ;;  %v28_v4 = vld [vmem:[%s2370_s0 + $0x8] sm:$0xff]  ;;  %v29_v5 = vld [vmem:[%s2370_s0 + $0x10] sm:$0xff]  ;;  %vm504_vm2 = vcmask 261120   ;;  %vm1040_vm3 = vcmask 523264  }
   0x7   :  { %1412 = vmatmul.msk.f32.vlgmr.msra.gmra.mxu0 %vm82_vm1, %v27_v3  ;;  %1500 = vmatpush.msra.mxu2 %v77_v2  ;;  %v30_v6 = vld [vmem:[%s2370_s0 + $0x18] sm:$0xff]  ;;  %v31_v7 = vld [vmem:[%s2370_s0 + $0x20] sm:$0xff]  ;;  %v32_v9 = vld [vmem:[%s2370_s0 + $0x28] sm:$0xff]  ;;  %vm1062_vm4 = vcmask 519168   ;;  %vm1367_vm5 = vcmask 818176   ;;  %s1534_s10 = smov [#allocation7]  }
   0x8   :  { %1501 = vmatpush.msra.mxu3 %v77_v2  ;;  %v51_v8 = vld [vmem:[%s2370_s0 + $0xc0] sm:$0xff]  ;;  %v60_v10 = vld [vmem:[%s2370_s0 + $0x108] sm:$0xff]  ;;  %v33_v12 = vld [vmem:[%s2370_s0 + $0x30] sm:$0xff]  ;;  %s1402_s12 = sshll.u32 %s2377_s7, 4  ;;  %s1403_s12 = int_to_ptr.hbm [resolvable:$true] %s1402_s12 }
   0x9   :  { %1436 = vmatmul.msk.f32.vlgmr.msra.gmra.mxu1 %vm82_vm1, %v51_v8  ;;  %1445 = vmatmul.msk.f32.vlgmr.msra.gmra.mxu2 %vm82_vm1, %v60_v10  ;;  %v52_v11 = vld [vmem:[%s2370_s0 + $0xc8] sm:$0xff]  ;;  %v61_v13 = vld [vmem:[%s2370_s0 + $0x110] sm:$0xff]  ;;  %v34_v16 = vld [vmem:[%s2370_s0 + $0x38] sm:$0xff] }
   0xa   :  { %v69_v14 = vld [vmem:[%s2370_s0 + $0x150] sm:$0xff]  ;;  %v62_v17 = vld [vmem:[%s2370_s0 + $0x118] sm:$0xff]  ;;  %v35_v20 = vld [vmem:[%s2370_s0 + $0x40] sm:$0xff] }
   0xb   :  { %v53_v15 = vld [vmem:[%s2370_s0 + $0xd0] sm:$0xff]  ;;  %1454 = vmatmul.msk.f32.vlgmr.msra.gmra.mxu3 %vm82_vm1, %v69_v14  ;;  %v70_v18 = vld [vmem:[%s2370_s0 + $0x158] sm:$0xff]  ;;  %v63_v21 = vld [vmem:[%s2370_s0 + $0x120] sm:$0xff] }
   0xc   :  { %v54_v19 = vld [vmem:[%s2370_s0 + $0xd8] sm:$0xff]  ;;  %v71_v22 = vld [vmem:[%s2370_s0 + $0x160] sm:$0xff]  ;;  %v36_v24 = vld [vmem:[%s2370_s0 + $0x48] sm:$0xff] }
   0xd   :  { %v55_v23 = vld [vmem:[%s2370_s0 + $0xe0] sm:$0xff]  ;;  %v64_v25 = vld [vmem:[%s2370_s0 + $0x128] sm:$0xff]  ;;  %v37_v28 = vld [vmem:[%s2370_s0 + $0x50] sm:$0xff] }
   0xe   :  { %v72_v26 = vld [vmem:[%s2370_s0 + $0x168] sm:$0xff]  ;;  %v65_v29 = vld [vmem:[%s2370_s0 + $0x130] sm:$0xff]  ;;  %v38_v32 = vld [vmem:[%s2370_s0 + $0x58] sm:$0xff] }
   0xf   :  { %1413 = vmatmul.msk.f32.gmra.mxu0 %vm82_vm1, %v28_v4  ;;  %v56_v27 = vld [vmem:[%s2370_s0 + $0xe8] sm:$0xff]  ;;  %v73_v30 = vld [vmem:[%s2370_s0 + $0x170] sm:$0xff]  ;;  %v66_v33 = vld [vmem:[%s2370_s0 + $0x138] sm:$0xff] }
  0x10   :  { %v57_v31 = vld [vmem:[%s2370_s0 + $0xf0] sm:$0xff]  ;;  %v74_v34 = vld [vmem:[%s2370_s0 + $0x178] sm:$0xff]  ;;  %v39_v35 = vld [vmem:[%s2370_s0 + $0x60] sm:$0xff] }
  0x11   :  { %1437 = vmatmul.msk.f32.gmra.mxu1 %vm82_vm1, %v52_v11  ;;  %1446 = vmatmul.msk.f32.gmra.mxu2 %vm82_vm1, %v61_v13  ;;  %v58_v36 = vld [vmem:[%s2370_s0 + $0xf8] sm:$0xff]  ;;  %v67_v37 = vld [vmem:[%s2370_s0 + $0x140] sm:$0xff]  ;;  %v40_v39 = vld [vmem:[%s2370_s0 + $0x68] sm:$0xff] }
  0x12   :  { %v75_v38 = vld [vmem:[%s2370_s0 + $0x180] sm:$0xff]  ;;  %v68_v41 = vld [vmem:[%s2370_s0 + $0x148] sm:$0xff]  ;;  %v41_v43 = vld [vmem:[%s2370_s0 + $0x70] sm:$0xff] }
  0x13   :  { %1455 = vmatmul.msk.f32.gmra.mxu3 %vm82_vm1, %v70_v18  ;;  %v59_v40 = vld [vmem:[%s2370_s0 + $0x100] sm:$0xff]  ;;  %v76_v42 = vld [vmem:[%s2370_s0 + $0x188] sm:$0xff]  ;;  %v42_v44 = vld [vmem:[%s2370_s0 + $0x78] sm:$0xff] }
  0x14   :  { %v1759_v45 = vld [vmem:[%s2376_s6] ss:$0 sm:$0xff]  ;;  %v44_v52 = vld [vmem:[%s2370_s0 + $0x88] sm:$0xff]  ;;  %v45_v57 = vld [vmem:[%s2370_s0 + $0x90] sm:$0xff] }
  0x15   :  { %v43_v47 = vld [vmem:[%s2370_s0 + $0x80] sm:$0xff]  ;;  %v46_v1 = vld [vmem:[%s2370_s0 + $0x98] sm:$0xff] }
  0x17   :  { %1414 = vmatmul.msk.f32.gmra.mxu0 %vm82_vm1, %v29_v5 }
  0x19   :  { %1438 = vmatmul.msk.f32.gmra.mxu1 %vm82_vm1, %v53_v15  ;;  %1447 = vmatmul.msk.f32.gmra.mxu2 %vm82_vm1, %v62_v17 }
  0x1b   :  { %1456 = vmatmul.msk.f32.gmra.mxu3 %vm82_vm1, %v71_v22 }
  0x1f   :  { %1415 = vmatmul.msk.f32.gmra.mxu0 %vm82_vm1, %v30_v6  ;;  %v47_v6 = vld [vmem:[%s2370_s0 + $0xa0] sm:$0xff] }
  0x21   :  { %1439 = vmatmul.msk.f32.gmra.mxu1 %vm82_vm1, %v54_v19  ;;  %1448 = vmatmul.msk.f32.gmra.mxu2 %vm82_vm1, %v63_v21 }
  0x23   :  { %1457 = vmatmul.msk.f32.gmra.mxu3 %vm82_vm1, %v72_v26 }
  0x27   :  { %1416 = vmatmul.msk.f32.gmra.mxu0 %vm82_vm1, %v31_v7 }
  0x29   :  { %1440 = vmatmul.msk.f32.gmra.mxu1 %vm82_vm1, %v55_v23  ;;  %1449 = vmatmul.msk.f32.gmra.mxu2 %vm82_vm1, %v64_v25  ;;  %v49_v25 = vld [vmem:[%s2370_s0 + $0xb0] sm:$0xff] }
  0x2b   :  { %1458 = vmatmul.msk.f32.gmra.mxu3 %vm82_vm1, %v73_v30 }
  0x2f   :  { %1417 = vmatmul.msk.f32.gmra.mxu0 %vm82_vm1, %v32_v9 }
  0x31   :  { %1441 = vmatmul.msk.f32.gmra.mxu1 %vm82_vm1, %v56_v27  ;;  %1450 = vmatmul.msk.f32.gmra.mxu2 %vm82_vm1, %v65_v29 }
  0x33   :  { %1459 = vmatmul.msk.f32.gmra.mxu3 %vm82_vm1, %v74_v34 }
  0x37   :  { %1418 = vmatmul.msk.f32.gmra.mxu0 %vm82_vm1, %v33_v12 }
  0x39   :  { %1442 = vmatmul.msk.f32.gmra.mxu1 %vm82_vm1, %v57_v31  ;;  %1451 = vmatmul.msk.f32.gmra.mxu2 %vm82_vm1, %v66_v33 }
  0x3b   :  { %1460 = vmatmul.msk.f32.gmra.mxu3 %vm82_vm1, %v75_v38 }
  0x3f   :  { %1419 = vmatmul.msk.f32.gmra.mxu0 %vm82_vm1, %v34_v16  ;;  %v48_v16 = vld [vmem:[%s2370_s0 + $0xa8] sm:$0xff] }
  0x41   :  { %1443 = vmatmul.msk.f32.gmra.mxu1 %vm82_vm1, %v58_v36  ;;  %1452 = vmatmul.msk.f32.gmra.mxu2 %vm82_vm1, %v67_v37 }
  0x43   :  { %1461 = vmatmul.msk.f32.gmra.mxu3 %vm82_vm1, %v76_v42 }
  0x47   :  { %1420 = vmatmul.msk.f32.gmra.mxu0 %vm82_vm1, %v35_v20 }
  0x49   :  { %1444 = vmatmul.msk.f32.gmra.mxu1 %vm82_vm1, %v59_v40  ;;  %1453 = vmatmul.msk.f32.gmra.mxu2 %vm82_vm1, %v68_v41  ;;  %v50_v40 = vld [vmem:[%s2370_s0 + $0xb8] sm:$0xff] }
  0x4f   :  { %1421 = vmatmul.msk.f32.gmra.mxu0 %vm82_vm1, %v36_v24 }
  0x57   :  { %1422 = vmatmul.msk.f32.gmra.mxu0 %vm82_vm1, %v37_v28 }
  0x5f   :  { %1423 = vmatmul.msk.f32.gmra.mxu0 %vm82_vm1, %v38_v32 }
  0x67   :  { %1424 = vmatmul.msk.f32.gmra.mxu0 %vm82_vm1, %v39_v35 }
  0x6f   :  { %1425 = vmatmul.msk.f32.gmra.mxu0 %vm82_vm1, %v40_v39 }
  0x77   :  { %1426 = vmatmul.msk.f32.gmra.mxu0 %vm82_vm1, %v41_v43 }
  0x7f   :  { %1427 = vmatmul.msk.f32.gmra.mxu0 %vm82_vm1, %v42_v44 }
  0x84   :  { %v254_v46 = vpop.f32.mrf.mxu0 }
  0x85   :  { %v255_v48 = vadd.f32 %v1759_v45, %v254_v46 }
  0x86   :  { %v326_v12 = vpop.f32.mrf.mxu1 }
  0x87   :  { %v404_v49 = vmul.f32 0.01, %v255_v48  ;;  %1428 = vmatmul.msk.f32.gmra.mxu0 %vm82_vm1, %v43_v47  ;;  %v327_v13 = vadd.f32 %v1759_v45, %v326_v12 }
  0x89   :  { %v454_v50 = vmax.f32 %v255_v48, %v404_v49  ;;  %v428_v18 = vmul.f32 0.01, %v327_v13  ;;  %v730_v48 = vld [vmem:[%s2372_s2 + $0x38] sm:$0xff] }
  0x8a   :  { %v716_v49 = vld [vmem:[%s2372_s2 + $0x18] sm:$0xff]  ;;  %758 = vmatpush.msrb.mxu1 %v730_v48 }
  0x8b   :  { %505 = vst.msk [vmem:[#allocation2] sm:$0xff] %vm504_vm2, %v454_v50  ;;  %v478_v20 = vmax.f32 %v327_v13, %v428_v18  ;;  %805 = vmatpush.msrb.mxu2 %v716_v49 }
  0x8c   :  { %v257_v51 = vpop.f32.mrf.mxu0  ;;  %v353_v23 = vpop.f32.mrf.mxu2 }
  0x8d   :  { %v258_v53 = vadd.f32 %v1759_v45, %v257_v51  ;;  %529 = vst.msk [vmem:[#allocation2 + $0xc0] sm:$0xff] %vm504_vm2, %v478_v20  ;;  %v354_v32 = vadd.f32 %v1759_v45, %v353_v23 }
  0x8e   :  { %v329_v22 = vpop.f32.mrf.mxu1  ;;  %v380_v37 = vpop.f32.mrf.mxu3 }
  0x8f   :  { %v405_v54 = vmul.f32 0.01, %v258_v53  ;;  %1429 = vmatmul.msk.f32.gmra.mxu0 %vm82_vm1, %v44_v52  ;;  %v330_v31 = vadd.f32 %v1759_v45, %v329_v22  ;;  %v437_v42 = vmul.f32 0.01, %v354_v32  ;;  %v381_v43 = vadd.f32 %v1759_v45, %v380_v37 }
  0x91   :  { %v455_v55 = vmax.f32 %v258_v53, %v405_v54  ;;  %v429_v41 = vmul.f32 0.01, %v330_v31  ;;  %v487_v51 = vmax.f32 %v354_v32, %v437_v42  ;;  %v446_v52 = vmul.f32 0.01, %v381_v43  ;;  %v838_v53 = vld [vmem:[%s2372_s2 + $0x58] sm:$0xff] }
  0x92   :  { %866 = vmatpush.msrb.mxu3 %v838_v53 }
  0x93   :  { %506 = vst.msk [vmem:[#allocation2 + $0x8] sm:$0xff] %vm504_vm2, %v455_v55  ;;  %v479_v50 = vmax.f32 %v330_v31, %v429_v41 }
  0x94   :  { %v260_v56 = vpop.f32.mrf.mxu0  ;;  %v356_v34 = vpop.f32.mrf.mxu2  ;;  %538 = vst.msk [vmem:[#allocation2 + $0x108] sm:$0xff] %vm504_vm2, %v487_v51 }
  0x95   :  { %v261_v58 = vadd.f32 %v1759_v45, %v260_v56  ;;  %v357_v36 = vadd.f32 %v1759_v45, %v356_v34  ;;  %v729_v56 = vld [vmem:[%s2372_s2 + $0x30] sm:$0xff]  ;;  %530 = vst.msk [vmem:[#allocation2 + $0xc8] sm:$0xff] %vm504_vm2, %v479_v50 }
  0x96   :  { %v332_v33 = vpop.f32.mrf.mxu1  ;;  %759 = vmatpush.msrb.mxu1 %v729_v56 }
  0x97   :  { %v406_v59 = vmul.f32 0.01, %v261_v58  ;;  %1430 = vmatmul.msk.f32.gmra.mxu0 %vm82_vm1, %v45_v57  ;;  %v333_v35 = vadd.f32 %v1759_v45, %v332_v33  ;;  %v438_v47 = vmul.f32 0.01, %v357_v36  ;;  %v715_v57 = vld [vmem:[%s2372_s2 + $0x10] sm:$0xff] }
  0x98   :  { %806 = vmatpush.msrb.mxu2 %v715_v57 }
  0x99   :  { %v456_v60 = vmax.f32 %v261_v58, %v406_v59  ;;  %v430_v46 = vmul.f32 0.01, %v333_v35  ;;  %v837_v58 = vld [vmem:[%s2372_s2 + $0x50] sm:$0xff]  ;;  %v488_v59 = vmax.f32 %v357_v36, %v438_v47 }
  0x9a   :  { %v555_v61 = vld [vmem:[#allocation2] ss:$2 sm:$0xff]  ;;  %v605_v62 = vld [vmem:[#allocation2 + $0x1] ss:$2 sm:$0xff]  ;;  %867 = vmatpush.msrb.mxu3 %v837_v58 }
  0x9b   :  { %507 = vst.msk [vmem:[#allocation2 + $0x10] sm:$0xff] %vm504_vm2, %v456_v60  ;;  %v654_v63 = vmax.f32 %v555_v61, %v605_v62  ;;  %v480_v55 = vmax.f32 %v333_v35, %v430_v46  ;;  %v496_v61 = vmax.f32 %v381_v43, %v446_v52  ;;  %v728_v62 = vld [vmem:[%s2372_s2 + $0x28] sm:$0xff] }
  0x9c   :  { %v263_v0 = vpop.f32.mrf.mxu0  ;;  %760 = vmatpush.msrb.mxu1 %v728_v62  ;;  %539 = vst.msk [vmem:[#allocation2 + $0x110] sm:$0xff] %vm504_vm2, %v488_v59 }
  0x9d   :  { %v264_v2 = vadd.f32 %v1759_v45, %v263_v0  ;;  %679 = vst.msk [vmem:[#allocation3] sm:$0xff] %vm504_vm2, %v654_v63  ;;  %v714_v63 = vld [vmem:[%s2372_s2 + $0x8] sm:$0xff] }
  0x9e   :  { %v836_v0 = vld [vmem:[%s2372_s2 + $0x48] sm:$0xff]  ;;  %531 = vst.msk [vmem:[#allocation2 + $0xd0] sm:$0xff] %vm504_vm2, %v480_v55  ;;  %807 = vmatpush.msrb.mxu2 %v714_v63 }
  0x9f   :  { %v407_v3 = vmul.f32 0.01, %v264_v2  ;;  %1431 = vmatmul.msk.f32.gmra.mxu0 %vm82_vm1, %v46_v1  ;;  %v335_v1 = vpop.f32.mrf.mxu1  ;;  %868 = vmatpush.msrb.mxu3 %v836_v0  ;;  %547 = vst.msk [vmem:[#allocation2 + $0x150] sm:$0xff] %vm504_vm2, %v496_v61 }
  0xa0   :  { %v336_v13 = vadd.f32 %v1759_v45, %v335_v1 }
  0xa1   :  { %v457_v4 = vmax.f32 %v264_v2, %v407_v3  ;;  %v359_v2 = vpop.f32.mrf.mxu2  ;;  %v383_v3 = vpop.f32.mrf.mxu3 }
  0xa2   :  { %v431_v20 = vmul.f32 0.01, %v336_v13 }
  0xa3   :  { %508 = vst.msk [vmem:[#allocation2 + $0x18] sm:$0xff] %vm504_vm2, %v457_v4  ;;  %v727_v4 = vld [vmem:[%s2372_s2 + $0x20] sm:$0xff] }
  0xa4   :  { %v266_v5 = vpop.f32.mrf.mxu0  ;;  %761 = vmatpush.msrb.mxu1 %v727_v4 }
  0xa5   :  { %v267_v7 = vadd.f32 %v1759_v45, %v266_v5  ;;  %v713_v5 = vld [vmem:[%s2372_s2] sm:$0xff] }
  0xa6   :  { %808 = vmatpush.msrb.mxu2 %v713_v5 }
  0xa7   :  { %v408_v8 = vmul.f32 0.01, %v267_v7  ;;  %1432 = vmatmul.msk.f32.gmra.mxu0 %vm82_vm1, %v47_v6  ;;  %v835_v6 = vld [vmem:[%s2372_s2 + $0x40] sm:$0xff] }
  0xa8   :  { %869 = vmatpush.msrb.mxu3 %v835_v6 }
  0xa9   :  { %v458_v9 = vmax.f32 %v267_v7, %v408_v8  ;;  %v362_v18 = vpop.f32.mrf.mxu2 }
  0xaa   :  { %v557_v10 = vld [vmem:[#allocation2 + $0x10] ss:$2 sm:$0xff]  ;;  %v607_v11 = vld [vmem:[#allocation2 + $0x11] ss:$2 sm:$0xff] }
  0xab   :  { %509 = vst.msk [vmem:[#allocation2 + $0x20] sm:$0xff] %vm504_vm2, %v458_v9  ;;  %v655_v14 = vmax.f32 %v557_v10, %v607_v11 }
  0xac   :  { %v269_v15 = vpop.f32.mrf.mxu0 }
  0xad   :  { %v270_v17 = vadd.f32 %v1759_v45, %v269_v15  ;;  %680 = vst.msk [vmem:[#allocation3 + $0x8] sm:$0xff] %vm504_vm2, %v655_v14  ;;  %v360_v14 = vadd.f32 %v1759_v45, %v359_v2  ;;  %v384_v15 = vadd.f32 %v1759_v45, %v383_v3 }
  0xaf   :  { %v409_v19 = vmul.f32 0.01, %v270_v17  ;;  %1433 = vmatmul.msk.f32.gmra.mxu0 %vm82_vm1, %v48_v16  ;;  %v447_v22 = vmul.f32 0.01, %v384_v15 }
  0xb1   :  { %v459_v21 = vmax.f32 %v270_v17, %v409_v19  ;;  %v338_v17 = vpop.f32.mrf.mxu1 }
  0xb2   :  { %v339_v23 = vadd.f32 %v1759_v45, %v338_v17 }
  0xb3   :  { %510 = vst.msk [vmem:[#allocation2 + $0x28] sm:$0xff] %vm504_vm2, %v459_v21  ;;  %v439_v21 = vmul.f32 0.01, %v360_v14 }
  0xb4   :  { %v272_v24 = vpop.f32.mrf.mxu0  ;;  %v432_v31 = vmul.f32 0.01, %v339_v23 }
  0xb5   :  { %v273_v26 = vadd.f32 %v1759_v45, %v272_v24  ;;  %v386_v24 = vpop.f32.mrf.mxu3 }
  0xb6   :  { %v482_v35 = vmax.f32 %v339_v23, %v432_v31 }
  0xb7   :  { %v410_v27 = vmul.f32 0.01, %v273_v26  ;;  %1434 = vmatmul.msk.f32.gmra.mxu0 %vm82_vm1, %v49_v25 }
  0xb8   :  { %533 = vst.msk [vmem:[#allocation2 + $0xe0] sm:$0xff] %vm504_vm2, %v482_v35 }
  0xb9   :  { %v460_v28 = vmax.f32 %v273_v26, %v410_v27  ;;  %v363_v26 = vadd.f32 %v1759_v45, %v362_v18  ;;  %v387_v27 = vadd.f32 %v1759_v45, %v386_v24 }
  0xba   :  { %v559_v29 = vld [vmem:[#allocation2 + $0x20] ss:$2 sm:$0xff]  ;;  %v609_v30 = vld [vmem:[#allocation2 + $0x21] ss:$2 sm:$0xff] }
  0xbb   :  { %511 = vst.msk [vmem:[#allocation2 + $0x30] sm:$0xff] %vm504_vm2, %v460_v28  ;;  %v656_v38 = vmax.f32 %v559_v29, %v609_v30  ;;  %v481_v28 = vmax.f32 %v336_v13, %v431_v20  ;;  %v489_v29 = vmax.f32 %v360_v14, %v439_v21  ;;  %v497_v30 = vmax.f32 %v384_v15, %v447_v22 }
  0xbc   :  { %v275_v39 = vpop.f32.mrf.mxu0  ;;  %v440_v33 = vmul.f32 0.01, %v363_v26  ;;  %v448_v34 = vmul.f32 0.01, %v387_v27 }
  0xbd   :  { %v276_v44 = vadd.f32 %v1759_v45, %v275_v39  ;;  %681 = vst.msk [vmem:[#allocation3 + $0x10] sm:$0xff] %vm504_vm2, %v656_v38  ;;  %v341_v39 = vpop.f32.mrf.mxu1  ;;  %v389_v42 = vpop.f32.mrf.mxu3 }
  0xbe   :  { %532 = vst.msk [vmem:[#allocation2 + $0xd8] sm:$0xff] %vm504_vm2, %v481_v28  ;;  %v490_v37 = vmax.f32 %v363_v26, %v440_v33  ;;  %v498_v38 = vmax.f32 %v387_v27, %v448_v34  ;;  %v342_v49 = vadd.f32 %v1759_v45, %v341_v39  ;;  %v390_v51 = vadd.f32 %v1759_v45, %v389_v42 }
  0xbf   :  { %v411_v54 = vmul.f32 0.01, %v276_v44  ;;  %1435 = vmatmul.msk.f32.gmra.mxu0 %vm82_vm1, %v50_v40  ;;  %540 = vst.msk [vmem:[#allocation2 + $0x118] sm:$0xff] %vm504_vm2, %v489_v29  ;;  %v365_v40 = vpop.f32.mrf.mxu2 }
  0xc0   :  { %548 = vst.msk [vmem:[#allocation2 + $0x158] sm:$0xff] %vm504_vm2, %v497_v30  ;;  %v366_v50 = vadd.f32 %v1759_v45, %v365_v40  ;;  %v433_v56 = vmul.f32 0.01, %v342_v49  ;;  %v449_v58 = vmul.f32 0.01, %v390_v51 }
  0xc1   :  { %v461_v60 = vmax.f32 %v276_v44, %v411_v54  ;;  %541 = vst.msk [vmem:[#allocation2 + $0x120] sm:$0xff] %vm504_vm2, %v490_v37 }
  0xc2   :  { %549 = vst.msk [vmem:[#allocation2 + $0x160] sm:$0xff] %vm504_vm2, %v498_v38  ;;  %v441_v57 = vmul.f32 0.01, %v366_v50  ;;  %v483_v0 = vmax.f32 %v342_v49, %v433_v56  ;;  %v499_v2 = vmax.f32 %v390_v51, %v449_v58  ;;  %v579_v49 = vld [vmem:[#allocation2 + $0xc0] ss:$2 sm:$0xff] }
  0xc3   :  { %512 = vst.msk [vmem:[#allocation2 + $0x38] sm:$0xff] %vm504_vm2, %v461_v60 }
  0xc4   :  { %v278_v7 = vpop.f32.mrf.mxu0  ;;  %v491_v1 = vmax.f32 %v366_v50, %v441_v57  ;;  %534 = vst.msk [vmem:[#allocation2 + $0xe8] sm:$0xff] %vm504_vm2, %v483_v0  ;;  %v629_v50 = vld [vmem:[#allocation2 + $0xc1] ss:$2 sm:$0xff] }
  0xc5   :  { %v279_v8 = vadd.f32 %v1759_v45, %v278_v7  ;;  %v344_v53 = vpop.f32.mrf.mxu1  ;;  %v392_v60 = vpop.f32.mrf.mxu3  ;;  %550 = vst.msk [vmem:[#allocation2 + $0x168] sm:$0xff] %vm504_vm2, %v499_v2  ;;  %v666_v58 = vmax.f32 %v579_v49, %v629_v50 }
  0xc6   :  { %v345_v59 = vadd.f32 %v1759_v45, %v344_v53  ;;  %v393_v63 = vadd.f32 %v1759_v45, %v392_v60  ;;  %542 = vst.msk [vmem:[#allocation2 + $0x128] sm:$0xff] %vm504_vm2, %v491_v1  ;;  %v589_v60 = vld [vmem:[#allocation2 + $0x110] ss:$2 sm:$0xff] }
  0xc7   :  { %v412_v9 = vmul.f32 0.01, %v279_v8  ;;  %v368_v54 = vpop.f32.mrf.mxu2  ;;  %691 = vst.msk [vmem:[#allocation3 + $0x60] sm:$0xff] %vm504_vm2, %v666_v58 }
  0xc8   :  { %v369_v62 = vadd.f32 %v1759_v45, %v368_v54  ;;  %v434_v3 = vmul.f32 0.01, %v345_v59  ;;  %v450_v6 = vmul.f32 0.01, %v393_v63 }
  0xc9   :  { %v462_v10 = vmax.f32 %v279_v8, %v412_v9 }
  0xca   :  { %v561_v11 = vld [vmem:[#allocation2 + $0x30] ss:$2 sm:$0xff]  ;;  %v611_v12 = vld [vmem:[#allocation2 + $0x31] ss:$2 sm:$0xff]  ;;  %v442_v5 = vmul.f32 0.01, %v369_v62  ;;  %v484_v8 = vmax.f32 %v345_v59, %v434_v3 }
  0xcb   :  { %513 = vst.msk [vmem:[#allocation2 + $0x40] sm:$0xff] %vm504_vm2, %v462_v10  ;;  %v657_v16 = vmax.f32 %v561_v11, %v611_v12 }
  0xcc   :  { %v281_v19 = vpop.f32.mrf.mxu0  ;;  %v492_v9 = vmax.f32 %v369_v62, %v442_v5  ;;  %535 = vst.msk [vmem:[#allocation2 + $0xf0] sm:$0xff] %vm504_vm2, %v484_v8 }
  0xcd   :  { %v282_v25 = vadd.f32 %v1759_v45, %v281_v19  ;;  %682 = vst.msk [vmem:[#allocation3 + $0x18] sm:$0xff] %vm504_vm2, %v657_v16  ;;  %v347_v10 = vpop.f32.mrf.mxu1  ;;  %v500_v16 = vmax.f32 %v393_v63, %v450_v6  ;;  %v395_v17 = vpop.f32.mrf.mxu3  ;;  %v591_v1 = vld [vmem:[#allocation2 + $0x120] ss:$2 sm:$0xff]  ;;  %v641_v2 = vld [vmem:[#allocation2 + $0x121] ss:$2 sm:$0xff] }
  0xce   :  { %543 = vst.msk [vmem:[#allocation2 + $0x130] sm:$0xff] %vm504_vm2, %v492_v9  ;;  %v348_v23 = vadd.f32 %v1759_v45, %v347_v10 }
  0xcf   :  { %v413_v32 = vmul.f32 0.01, %v282_v25  ;;  %v371_v11 = vpop.f32.mrf.mxu2  ;;  %551 = vst.msk [vmem:[#allocation2 + $0x170] sm:$0xff] %vm504_vm2, %v500_v16 }
  0xd0   :  { %v372_v24 = vadd.f32 %v1759_v45, %v371_v11  ;;  %v435_v30 = vmul.f32 0.01, %v348_v23 }
  0xd1   :  { %v463_v36 = vmax.f32 %v282_v25, %v413_v32  ;;  %v396_v25 = vadd.f32 %v1759_v45, %v395_v17 }
  0xd2   :  { %v443_v31 = vmul.f32 0.01, %v372_v24  ;;  %v485_v38 = vmax.f32 %v348_v23, %v435_v30  ;;  %v647_v23 = vld [vmem:[#allocation2 + $0x151] ss:$2 sm:$0xff] }
  0xd3   :  { %514 = vst.msk [vmem:[#allocation2 + $0x48] sm:$0xff] %vm504_vm2, %v463_v36  ;;  %v451_v32 = vmul.f32 0.01, %v396_v25 }
  0xd4   :  { %v284_v41 = vpop.f32.mrf.mxu0  ;;  %v493_v39 = vmax.f32 %v372_v24, %v443_v31  ;;  %536 = vst.msk [vmem:[#allocation2 + $0xf8] sm:$0xff] %vm504_vm2, %v485_v38  ;;  %v599_v24 = vld [vmem:[#allocation2 + $0x160] ss:$2 sm:$0xff] }
  0xd5   :  { %v285_v43 = vadd.f32 %v1759_v45, %v284_v41  ;;  %v350_v26 = vpop.f32.mrf.mxu1  ;;  %v398_v34 = vpop.f32.mrf.mxu3  ;;  %v501_v40 = vmax.f32 %v396_v25, %v451_v32 }
  0xd6   :  { %v351_v33 = vadd.f32 %v1759_v45, %v350_v26  ;;  %v399_v37 = vadd.f32 %v1759_v45, %v398_v34  ;;  %544 = vst.msk [vmem:[#allocation2 + $0x138] sm:$0xff] %vm504_vm2, %v493_v39  ;;  %v649_v26 = vld [vmem:[#allocation2 + $0x161] ss:$2 sm:$0xff] }
  0xd7   :  { %v414_v44 = vmul.f32 0.01, %v285_v43  ;;  %v374_v27 = vpop.f32.mrf.mxu2  ;;  %552 = vst.msk [vmem:[#allocation2 + $0x178] sm:$0xff] %vm504_vm2, %v501_v40  ;;  %v676_v38 = vmax.f32 %v599_v24, %v649_v26 }
  0xd8   :  { %v375_v36 = vadd.f32 %v1759_v45, %v374_v27  ;;  %v436_v41 = vmul.f32 0.01, %v351_v33 }
  0xd9   :  { %v464_v46 = vmax.f32 %v285_v43, %v414_v44  ;;  %v452_v44 = vmul.f32 0.01, %v399_v37  ;;  %701 = vst.msk [vmem:[#allocation3 + $0xb0] sm:$0xff] %vm504_vm2, %v676_v38 }
  0xda   :  { %v563_v47 = vld [vmem:[#allocation2 + $0x40] ss:$2 sm:$0xff]  ;;  %v613_v48 = vld [vmem:[#allocation2 + $0x41] ss:$2 sm:$0xff]  ;;  %v444_v43 = vmul.f32 0.01, %v375_v36 }
  0xdb   :  { %515 = vst.msk [vmem:[#allocation2 + $0x50] sm:$0xff] %vm504_vm2, %v464_v46  ;;  %v658_v52 = vmax.f32 %v563_v47, %v613_v48  ;;  %v486_v46 = vmax.f32 %v351_v33, %v436_v41  ;;  %v502_v51 = vmax.f32 %v399_v37, %v452_v44  ;;  %v585_v63 = vld [vmem:[#allocation2 + $0xf0] ss:$2 sm:$0xff]  ;;  %v635_v0 = vld [vmem:[#allocation2 + $0xf1] ss:$2 sm:$0xff] }
  0xdc   :  { %v287_v55 = vpop.f32.mrf.mxu0  ;;  %v494_v48 = vmax.f32 %v375_v36, %v444_v43  ;;  %v669_v11 = vmax.f32 %v585_v63, %v635_v0 }
  0xdd   :  { %v288_v61 = vadd.f32 %v1759_v45, %v287_v55  ;;  %683 = vst.msk [vmem:[#allocation3 + $0x20] sm:$0xff] %vm504_vm2, %v658_v52  ;;  %v401_v55 = vpop.f32.mrf.mxu3  ;;  %v593_v6 = vld [vmem:[#allocation2 + $0x130] ss:$2 sm:$0xff] }
  0xde   :  { %537 = vst.msk [vmem:[#allocation2 + $0x100] sm:$0xff] %vm504_vm2, %v486_v46  ;;  %v402_v57 = vadd.f32 %v1759_v45, %v401_v55 }
  0xdf   :  { %v415_v4 = vmul.f32 0.01, %v288_v61  ;;  %v377_v52 = vpop.f32.mrf.mxu2  ;;  %545 = vst.msk [vmem:[#allocation2 + $0x140] sm:$0xff] %vm504_vm2, %v494_v48 }
  0xe0   :  { %v378_v54 = vadd.f32 %v1759_v45, %v377_v52  ;;  %553 = vst.msk [vmem:[#allocation2 + $0x180] sm:$0xff] %vm504_vm2, %v502_v51  ;;  %v583_v51 = vld [vmem:[#allocation2 + $0xe0] ss:$2 sm:$0xff]  ;;  %v633_v52 = vld [vmem:[#allocation2 + $0xe1] ss:$2 sm:$0xff] }
  0xe1   :  { %v465_v7 = vmax.f32 %v288_v61, %v415_v4  ;;  %v639_v61 = vld [vmem:[#allocation2 + $0x111] ss:$2 sm:$0xff]  ;;  %v453_v4 = vmul.f32 0.01, %v402_v57  ;;  %694 = vst.msk [vmem:[#allocation3 + $0x78] sm:$0xff] %vm504_vm2, %v669_v11  ;;  %v668_v55 = vmax.f32 %v583_v51, %v633_v52 }
  0xe2   :  { %v445_v59 = vmul.f32 0.01, %v378_v54  ;;  %v671_v17 = vmax.f32 %v589_v60, %v639_v61  ;;  %v904_v11 = vld [vmem:[%s2372_s2 + $0x78] sm:$0xff] }
  0xe3   :  { %516 = vst.msk [vmem:[#allocation2 + $0x58] sm:$0xff] %vm504_vm2, %v465_v7  ;;  %v643_v7 = vld [vmem:[#allocation2 + $0x131] ss:$2 sm:$0xff]  ;;  %v503_v10 = vmax.f32 %v402_v57, %v453_v4  ;;  %932 = vmatpush.msra.mxu1 %v904_v11 }
  0xe4   :  { %v290_v12 = vpop.f32.mrf.mxu0  ;;  %v718_v13 = vld [vmem:[#allocation3 + $0x1] ss:$5 sm:$0xff]  ;;  %v704_v14 = vld [vmem:[#allocation3] ss:$5 sm:$0xff]  ;;  %v495_v3 = vmax.f32 %v378_v54, %v445_v59  ;;  %v673_v25 = vmax.f32 %v593_v6, %v643_v7  ;;  %696 = vst.msk [vmem:[#allocation3 + $0x88] sm:$0xff] %vm504_vm2, %v671_v17 }
  0xe5   :  { %v826_v15 = vld [vmem:[#allocation3 + $0x2] ss:$5 sm:$0xff]  ;;  %v291_v18 = vadd.f32 %v1759_v45, %v290_v12  ;;  %1462 = vmatmul.msk.f32.vlgmr.msrb.gmra.mxu1 %vm504_vm2, %v718_v13  ;;  %1467 = vmatmul.msk.f32.vlgmr.msrb.gmra.mxu2 %vm504_vm2, %v704_v14  ;;  %554 = vst.msk [vmem:[#allocation2 + $0x188] sm:$0xff] %vm504_vm2, %v503_v10 }
  0xe6   :  { %1472 = vmatmul.msk.f32.vlgmr.msrb.gmra.mxu3 %vm504_vm2, %v826_v15  ;;  %546 = vst.msk [vmem:[#allocation2 + $0x148] sm:$0xff] %vm504_vm2, %v495_v3  ;;  %v587_v12 = vld [vmem:[#allocation2 + $0x100] ss:$2 sm:$0xff]  ;;  %v637_v13 = vld [vmem:[#allocation2 + $0x101] ss:$2 sm:$0xff] }
  0xe7   :  { %v416_v19 = vmul.f32 0.01, %v291_v18  ;;  %v670_v16 = vmax.f32 %v587_v12, %v637_v13  ;;  %698 = vst.msk [vmem:[#allocation3 + $0x98] sm:$0xff] %vm504_vm2, %v673_v25  ;;  %v969_v12 = vld [vmem:[%s2372_s2 + $0x90] sm:$0xff] }
  0xe8   :  { %693 = vst.msk [vmem:[#allocation3 + $0x70] sm:$0xff] %vm504_vm2, %v668_v55  ;;  %v903_v13 = vld [vmem:[%s2372_s2 + $0x70] sm:$0xff] }
  0xe9   :  { %v466_v20 = vmax.f32 %v291_v18, %v416_v19  ;;  %v581_v18 = vld [vmem:[#allocation2 + $0xd0] ss:$2 sm:$0xff]  ;;  %v631_v19 = vld [vmem:[#allocation2 + $0xd1] ss:$2 sm:$0xff]  ;;  %695 = vst.msk [vmem:[#allocation3 + $0x80] sm:$0xff] %vm504_vm2, %v670_v16  ;;  %933 = vmatpush.msra.mxu1 %v903_v13 }
  0xea   :  { %v565_v21 = vld [vmem:[#allocation2 + $0x50] ss:$2 sm:$0xff]  ;;  %v615_v22 = vld [vmem:[#allocation2 + $0x51] ss:$2 sm:$0xff]  ;;  %v667_v33 = vmax.f32 %v581_v18, %v631_v19 }
  0xeb   :  { %517 = vst.msk [vmem:[#allocation2 + $0x60] sm:$0xff] %vm504_vm2, %v466_v20  ;;  %v659_v28 = vmax.f32 %v565_v21, %v615_v22  ;;  %v597_v20 = vld [vmem:[#allocation2 + $0x150] ss:$2 sm:$0xff]  ;;  %v672_v22 = vmax.f32 %v591_v1, %v641_v2 }
  0xec   :  { %v293_v29 = vpop.f32.mrf.mxu0  ;;  %v603_v36 = vld [vmem:[#allocation2 + $0x180] ss:$2 sm:$0xff]  ;;  %v653_v37 = vld [vmem:[#allocation2 + $0x181] ss:$2 sm:$0xff]  ;;  %692 = vst.msk [vmem:[#allocation3 + $0x68] sm:$0xff] %vm504_vm2, %v667_v33 }
  0xed   :  { %v294_v35 = vadd.f32 %v1759_v45, %v293_v29  ;;  %684 = vst.msk [vmem:[#allocation3 + $0x28] sm:$0xff] %vm504_vm2, %v659_v28  ;;  %v601_v28 = vld [vmem:[#allocation2 + $0x170] ss:$2 sm:$0xff]  ;;  %v651_v29 = vld [vmem:[#allocation2 + $0x171] ss:$2 sm:$0xff] }
  0xee   :  { %v595_v31 = vld [vmem:[#allocation2 + $0x140] ss:$2 sm:$0xff]  ;;  %v645_v32 = vld [vmem:[#allocation2 + $0x141] ss:$2 sm:$0xff]  ;;  %697 = vst.msk [vmem:[#allocation3 + $0x90] sm:$0xff] %vm504_vm2, %v672_v22  ;;  %v677_v40 = vmax.f32 %v601_v28, %v651_v29 }
  0xef   :  { %v417_v42 = vmul.f32 0.01, %v294_v35  ;;  %v674_v34 = vmax.f32 %v595_v31, %v645_v32  ;;  %v902_v31 = vld [vmem:[%s2372_s2 + $0x68] sm:$0xff] }
  0xf0   :  { %702 = vst.msk [vmem:[#allocation3 + $0xb8] sm:$0xff] %vm504_vm2, %v677_v40  ;;  %934 = vmatpush.msra.mxu1 %v902_v31  ;;  %v1081_v31 = vld [vmem:[%s2373_s3 + $0x50] sm:$0xff] }
  0xf1   :  { %v467_v47 = vmax.f32 %v294_v35, %v417_v42  ;;  %v675_v35 = vmax.f32 %v597_v20, %v647_v23  ;;  %699 = vst.msk [vmem:[#allocation3 + $0xa0] sm:$0xff] %vm504_vm2, %v674_v34  ;;  %v678_v42 = vmax.f32 %v603_v36, %v653_v37  ;;  %v968_v23 = vld [vmem:[%s2372_s2 + $0x88] sm:$0xff]  ;;  %v967_v34 = vld [vmem:[%s2372_s2 + $0x80] sm:$0xff] }
  0xf3   :  { %518 = vst.msk [vmem:[#allocation2 + $0x68] sm:$0xff] %vm504_vm2, %v467_v47 }
  0xf4   :  { %v296_v53 = vpop.f32.mrf.mxu0  ;;  %700 = vst.msk [vmem:[#allocation3 + $0xa8] sm:$0xff] %vm504_vm2, %v675_v35 }
  0xf5   :  { %v297_v56 = vadd.f32 %v1759_v45, %v296_v53  ;;  %703 = vst.msk [vmem:[#allocation3 + $0xc0] sm:$0xff] %vm504_vm2, %v678_v42  ;;  %v710_v42 = vld [vmem:[#allocation3 + $0x78] ss:$5 sm:$0xff]  ;;  %v964_v55 = vld [vmem:[#allocation3 + $0x7c] ss:$5 sm:$0xff] }
  0xf7   :  { %v418_v62 = vmul.f32 0.01, %v297_v56 }
  0xf9   :  { %v468_v5 = vmax.f32 %v297_v56, %v418_v62 }
  0xfa   :  { %v567_v8 = vld [vmem:[#allocation2 + $0x60] ss:$2 sm:$0xff]  ;;  %v617_v9 = vld [vmem:[#allocation2 + $0x61] ss:$2 sm:$0xff] }
  0xfb   :  { %519 = vst.msk [vmem:[#allocation2 + $0x70] sm:$0xff] %vm504_vm2, %v468_v5  ;;  %v660_v14 = vmax.f32 %v567_v8, %v617_v9  ;;  %v970_v9 = vld [vmem:[%s2372_s2 + $0x98] sm:$0xff] }
  0xfc   :  { %v299_v15 = vpop.f32.mrf.mxu0  ;;  %998 = vmatpush.msra.mxu2 %v970_v9 }
  0xfd   :  { %v300_v21 = vadd.f32 %v1759_v45, %v299_v15  ;;  %685 = vst.msk [vmem:[#allocation3 + $0x30] sm:$0xff] %vm504_vm2, %v660_v14 }
  0xfe   :  { %999 = vmatpush.msra.mxu2 %v969_v12  ;;  %v2019_v12 = vld [vmem:[%s2376_s6 + $0x1] ss:$0 sm:$0xff] }
  0xff   :  { %v419_v27 = vmul.f32 0.01, %v300_v21 }
 0x100   :  { %1000 = vmatpush.msra.mxu2 %v968_v23 }
 0x101   :  { %v469_v30 = vmax.f32 %v300_v21, %v419_v27 }
 0x102   :  { %1001 = vmatpush.msra.mxu2 %v967_v34  ;;  %v1080_v34 = vld [vmem:[%s2373_s3 + $0x48] sm:$0xff] }
 0x103   :  { %520 = vst.msk [vmem:[#allocation2 + $0x78] sm:$0xff] %vm504_vm2, %v469_v30 }
 0x104   :  { %v302_v39 = vpop.f32.mrf.mxu0 }
 0x105   :  { %v303_v41 = vadd.f32 %v1759_v45, %v302_v39 }
 0x107   :  { %v420_v43 = vmul.f32 0.01, %v303_v41 }
 0x109   :  { %v470_v44 = vmax.f32 %v303_v41, %v420_v43  ;;  %v724_v41 = vld [vmem:[#allocation3 + $0x79] ss:$5 sm:$0xff]  ;;  %v832_v43 = vld [vmem:[#allocation3 + $0x7a] ss:$5 sm:$0xff] }
 0x10a   :  { %v569_v46 = vld [vmem:[#allocation2 + $0x70] ss:$2 sm:$0xff]  ;;  %v619_v47 = vld [vmem:[#allocation2 + $0x71] ss:$2 sm:$0xff] }
 0x10b   :  { %521 = vst.msk [vmem:[#allocation2 + $0x80] sm:$0xff] %vm504_vm2, %v470_v44  ;;  %v661_v48 = vmax.f32 %v569_v46, %v619_v47  ;;  %v726_v44 = vld [vmem:[#allocation3 + $0xa1] ss:$5 sm:$0xff]  ;;  %v712_v46 = vld [vmem:[#allocation3 + $0xa0] ss:$5 sm:$0xff] }
 0x10c   :  { %v305_v49 = vpop.f32.mrf.mxu0  ;;  %v834_v47 = vld [vmem:[#allocation3 + $0xa2] ss:$5 sm:$0xff] }
 0x10d   :  { %v306_v50 = vadd.f32 %v1759_v45, %v305_v49  ;;  %686 = vst.msk [vmem:[#allocation3 + $0x38] sm:$0xff] %vm504_vm2, %v661_v48  ;;  %v892_v48 = vld [vmem:[#allocation3 + $0x3] ss:$5 sm:$0xff]  ;;  %v958_v49 = vld [vmem:[#allocation3 + $0x4] ss:$5 sm:$0xff] }
 0x10f   :  { %v421_v53 = vmul.f32 0.01, %v306_v50 }
 0x111   :  { %v471_v54 = vmax.f32 %v306_v50, %v421_v53 }
 0x113   :  { %522 = vst.msk [vmem:[#allocation2 + $0x88] sm:$0xff] %vm504_vm2, %v471_v54  ;;  %v898_v54 = vld [vmem:[#allocation3 + $0x7b] ss:$5 sm:$0xff] }
 0x114   :  { %v308_v56 = vpop.f32.mrf.mxu0 }
 0x115   :  { %v309_v57 = vadd.f32 %v1759_v45, %v308_v56  ;;  %v900_v56 = vld [vmem:[#allocation3 + $0xa3] ss:$5 sm:$0xff] }
 0x117   :  { %v422_v58 = vmul.f32 0.01, %v309_v57 }
 0x119   :  { %v472_v59 = vmax.f32 %v309_v57, %v422_v58  ;;  %v966_v57 = vld [vmem:[#allocation3 + $0xa4] ss:$5 sm:$0xff] }
 0x11a   :  { %v571_v60 = vld [vmem:[#allocation2 + $0x80] ss:$2 sm:$0xff]  ;;  %v621_v61 = vld [vmem:[#allocation2 + $0x81] ss:$2 sm:$0xff] }
 0x11b   :  { %523 = vst.msk [vmem:[#allocation2 + $0x90] sm:$0xff] %vm504_vm2, %v472_v59  ;;  %v662_v62 = vmax.f32 %v571_v60, %v621_v61 }
 0x11c   :  { %v311_v63 = vpop.f32.mrf.mxu0 }
 0x11d   :  { %v312_v0 = vadd.f32 %v1759_v45, %v311_v63  ;;  %687 = vst.msk [vmem:[#allocation3 + $0x40] sm:$0xff] %vm504_vm2, %v662_v62 }
 0x11f   :  { %v423_v1 = vmul.f32 0.01, %v312_v0 }
 0x121   :  { %v473_v2 = vmax.f32 %v312_v0, %v423_v1 }
 0x123   :  { %524 = vst.msk [vmem:[#allocation2 + $0x98] sm:$0xff] %vm504_vm2, %v473_v2 }
 0x124   :  { %v314_v3 = vpop.f32.mrf.mxu0 }
 0x125   :  { %v315_v4 = vadd.f32 %v1759_v45, %v314_v3 }
 0x127   :  { %v424_v5 = vmul.f32 0.01, %v315_v4 }
 0x129   :  { %v474_v6 = vmax.f32 %v315_v4, %v424_v5 }
 0x12a   :  { %v573_v7 = vld [vmem:[#allocation2 + $0x90] ss:$2 sm:$0xff]  ;;  %v623_v8 = vld [vmem:[#allocation2 + $0x91] ss:$2 sm:$0xff] }
 0x12b   :  { %525 = vst.msk [vmem:[#allocation2 + $0xa0] sm:$0xff] %vm504_vm2, %v474_v6  ;;  %v663_v10 = vmax.f32 %v573_v7, %v623_v8  ;;  %v1086_v7 = vld [vmem:[%s2373_s3 + $0x78] sm:$0xff]  ;;  %v1085_v8 = vld [vmem:[%s2373_s3 + $0x70] sm:$0xff] }
 0x12c   :  { %v317_v14 = vpop.f32.mrf.mxu0  ;;  %1101 = vmatpush.msra.mxu3 %v1086_v7 }
 0x12d   :  { %v318_v15 = vadd.f32 %v1759_v45, %v317_v14  ;;  %688 = vst.msk [vmem:[#allocation3 + $0x48] sm:$0xff] %vm504_vm2, %v663_v10  ;;  %v1084_v10 = vld [vmem:[%s2373_s3 + $0x68] sm:$0xff] }
 0x12e   :  { %1102 = vmatpush.msra.mxu3 %v1085_v8 }
 0x12f   :  { %v425_v16 = vmul.f32 0.01, %v318_v15 }
 0x130   :  { %1103 = vmatpush.msra.mxu3 %v1084_v10 }
 0x131   :  { %v475_v17 = vmax.f32 %v318_v15, %v425_v16 }
 0x133   :  { %526 = vst.msk [vmem:[#allocation2 + $0xa8] sm:$0xff] %vm504_vm2, %v475_v17 }
 0x134   :  { %v320_v18 = vpop.f32.mrf.mxu0  ;;  %v720_v19 = vld [vmem:[#allocation3 + $0x29] ss:$5 sm:$0xff]  ;;  %v706_v20 = vld [vmem:[#allocation3 + $0x28] ss:$5 sm:$0xff] }
 0x135   :  { %v828_v21 = vld [vmem:[#allocation3 + $0x2a] ss:$5 sm:$0xff]  ;;  %v321_v22 = vadd.f32 %v1759_v45, %v320_v18  ;;  %1463 = vmatmul.msk.f32.gmra.mxu1 %vm504_vm2, %v720_v19  ;;  %1468 = vmatmul.msk.f32.gmra.mxu2 %vm504_vm2, %v706_v20  ;;  %v894_v50 = vld [vmem:[#allocation3 + $0x2b] ss:$5 sm:$0xff] }
 0x136   :  { %1473 = vmatmul.msk.f32.gmra.mxu3 %vm504_vm2, %v828_v21  ;;  %v960_v51 = vld [vmem:[#allocation3 + $0x2c] ss:$5 sm:$0xff] }
 0x137   :  { %v426_v24 = vmul.f32 0.01, %v321_v22 }
 0x139   :  { %v476_v25 = vmax.f32 %v321_v22, %v426_v24 }
 0x13a   :  { %v575_v26 = vld [vmem:[#allocation2 + $0xa0] ss:$2 sm:$0xff]  ;;  %v625_v27 = vld [vmem:[#allocation2 + $0xa1] ss:$2 sm:$0xff] }
 0x13b   :  { %527 = vst.msk [vmem:[#allocation2 + $0xb0] sm:$0xff] %vm504_vm2, %v476_v25  ;;  %v664_v28 = vmax.f32 %v575_v26, %v625_v27 }
 0x13c   :  { %v323_v29 = vpop.f32.mrf.mxu0 }
 0x13d   :  { %v324_v30 = vadd.f32 %v1759_v45, %v323_v29  ;;  %689 = vst.msk [vmem:[#allocation3 + $0x50] sm:$0xff] %vm504_vm2, %v664_v28  ;;  %v901_v45 = vld [vmem:[%s2372_s2 + $0x60] sm:$0xff] }
 0x13e   :  { %935 = vmatpush.msra.mxu1 %v901_v45  ;;  %v1083_v28 = vld [vmem:[%s2373_s3 + $0x60] sm:$0xff] }
 0x13f   :  { %v427_v32 = vmul.f32 0.01, %v324_v30  ;;  %1104 = vmatpush.msra.mxu3 %v1083_v28  ;;  %v1166_v28 = vld [vmem:[%s2374_s4 + $0x50] sm:$0xff] }
 0x141   :  { %v477_v33 = vmax.f32 %v324_v30, %v427_v32  ;;  %v1082_v30 = vld [vmem:[%s2373_s3 + $0x58] sm:$0xff] }
 0x142   :  { %1105 = vmatpush.msra.mxu3 %v1082_v30  ;;  %v1165_v30 = vld [vmem:[%s2374_s4 + $0x48] sm:$0xff] }
 0x143   :  { %528 = vst.msk [vmem:[#allocation2 + $0xb8] sm:$0xff] %vm504_vm2, %v477_v33 }
 0x144   :  { %1106 = vmatpush.msra.mxu3 %v1081_v31  ;;  %v1182_v31 = vld [vmem:[%s2374_s4 + $0xc0] sm:$0xff] }
 0x146   :  { %1107 = vmatpush.msra.mxu3 %v1080_v34  ;;  %v1163_v34 = vld [vmem:[%s2374_s4 + $0x38] sm:$0xff] }
 0x14a   :  { %v577_v35 = vld [vmem:[#allocation2 + $0xb0] ss:$2 sm:$0xff]  ;;  %v627_v36 = vld [vmem:[#allocation2 + $0xb1] ss:$2 sm:$0xff] }
 0x14b   :  { %v665_v37 = vmax.f32 %v577_v35, %v627_v36 }
 0x14d   :  { %690 = vst.msk [vmem:[#allocation3 + $0x58] sm:$0xff] %vm504_vm2, %v665_v37  ;;  %v1079_v37 = vld [vmem:[%s2373_s3 + $0x40] sm:$0xff] }
 0x14e   :  { %1108 = vmatpush.msra.mxu3 %v1079_v37  ;;  %v1179_v37 = vld [vmem:[%s2374_s4 + $0xa8] sm:$0xff] }
 0x154   :  { %v722_v38 = vld [vmem:[#allocation3 + $0x51] ss:$5 sm:$0xff]  ;;  %v708_v39 = vld [vmem:[#allocation3 + $0x50] ss:$5 sm:$0xff] }
 0x155   :  { %v830_v40 = vld [vmem:[#allocation3 + $0x52] ss:$5 sm:$0xff]  ;;  %1464 = vmatmul.msk.f32.gmra.mxu1 %vm504_vm2, %v722_v38  ;;  %1469 = vmatmul.msk.f32.gmra.mxu2 %vm504_vm2, %v708_v39  ;;  %v896_v52 = vld [vmem:[#allocation3 + $0x53] ss:$5 sm:$0xff] }
 0x156   :  { %1474 = vmatmul.msk.f32.gmra.mxu3 %vm504_vm2, %v830_v40  ;;  %v962_v53 = vld [vmem:[#allocation3 + $0x54] ss:$5 sm:$0xff] }
 0x15d   :  { %1465 = vmatmul.msk.f32.gmra.mxu1 %vm504_vm2, %v724_v41  ;;  %1470 = vmatmul.msk.f32.gmra.mxu2 %vm504_vm2, %v710_v42 }
 0x15e   :  { %1475 = vmatmul.msk.f32.gmra.mxu3 %vm504_vm2, %v832_v43  ;;  %v1074_v43 = vld [vmem:[%s2373_s3 + $0x38] sm:$0xff] }
 0x15f   :  { %1130 = vmatpush.msrb.mxu3 %v1074_v43  ;;  %v1247_v43 = vld [vmem:[%s2374_s4 + $0x178] sm:$0xff] }
 0x162   :  { %v763_v58 = vpop.f32.mrf.mxu1 }
 0x165   :  { %1466 = vmatmul.msk.f32.gmra.mxu1 %vm504_vm2, %v726_v44  ;;  %1471 = vmatmul.msk.f32.gmra.mxu2 %vm504_vm2, %v712_v46  ;;  %v1073_v44 = vld [vmem:[%s2373_s3 + $0x30] sm:$0xff] }
 0x166   :  { %1476 = vmatmul.msk.f32.gmra.mxu3 %vm504_vm2, %v834_v47 }
 0x167   :  { %1131 = vmatpush.msrb.mxu3 %v1073_v44  ;;  %v1177_v44 = vld [vmem:[%s2374_s4 + $0x98] sm:$0xff] }
 0x168   :  { %v810_v59 = vpop.f32.mrf.mxu2 }
 0x169   :  { %v871_v3 = vpop.f32.mrf.mxu3  ;;  %v811_v5 = vadd.f32 %v810_v59, %v763_v58  ;;  %v1070_v59 = vld [vmem:[%s2373_s3 + $0x18] sm:$0xff] }
 0x16b   :  { %v886_v9 = vadd.f32 %v871_v3, %v811_v5 }
 0x16d   :  { %1477 = vmatmul.msk.f32.vlgmr.msra.gmra.mxu1 %vm504_vm2, %v892_v48  ;;  %1482 = vmatmul.msk.f32.vlgmr.msra.gmra.mxu2 %vm504_vm2, %v958_v49  ;;  %v1072_v48 = vld [vmem:[%s2373_s3 + $0x28] sm:$0xff] }
 0x16e   :  { %1132 = vmatpush.msrb.mxu3 %v1072_v48  ;;  %v1176_v48 = vld [vmem:[%s2374_s4 + $0x90] sm:$0xff] }
 0x175   :  { %1478 = vmatmul.msk.f32.gmra.mxu1 %vm504_vm2, %v894_v50  ;;  %1483 = vmatmul.msk.f32.gmra.mxu2 %vm504_vm2, %v960_v51  ;;  %v1071_v51 = vld [vmem:[%s2373_s3 + $0x20] sm:$0xff] }
 0x176   :  { %1133 = vmatpush.msrb.mxu3 %v1071_v51  ;;  %v1175_v51 = vld [vmem:[%s2374_s4 + $0x88] sm:$0xff] }
 0x178   :  { %1134 = vmatpush.msrb.mxu3 %v1070_v59  ;;  %v1242_v59 = vld [vmem:[%s2374_s4 + $0x150] sm:$0xff] }
 0x17d   :  { %1479 = vmatmul.msk.f32.gmra.mxu1 %vm504_vm2, %v896_v52  ;;  %1484 = vmatmul.msk.f32.gmra.mxu2 %vm504_vm2, %v962_v53 }
 0x185   :  { %1480 = vmatmul.msk.f32.gmra.mxu1 %vm504_vm2, %v898_v54  ;;  %1485 = vmatmul.msk.f32.gmra.mxu2 %vm504_vm2, %v964_v55 }
 0x18d   :  { %1481 = vmatmul.msk.f32.gmra.mxu1 %vm504_vm2, %v900_v56  ;;  %1486 = vmatmul.msk.f32.gmra.mxu2 %vm504_vm2, %v966_v57 }
 0x1b2   :  { %v766_v60 = vpop.f32.mrf.mxu1 }
 0x1b8   :  { %v813_v61 = vpop.f32.mrf.mxu2 }
 0x1b9   :  { %v874_v13 = vpop.f32.mrf.mxu3  ;;  %v814_v15 = vadd.f32 %v813_v61, %v766_v60  ;;  %v1069_v60 = vld [vmem:[%s2373_s3 + $0x10] sm:$0xff] }
 0x1ba   :  { %1135 = vmatpush.msrb.mxu3 %v1069_v60  ;;  %v1285_v60 = vld [vmem:[%s2374_s4 + $0x1f0] sm:$0xff] }
 0x1bb   :  { %v887_v19 = vadd.f32 %v874_v13, %v814_v15  ;;  %v1171_v15 = vld [vmem:[%s2374_s4 + $0x78] sm:$0xff] }
 0x1bc   :  { %1210 = vmatpush.msrb.mxu2 %v1171_v15  ;;  %v1279_v15 = vld [vmem:[%s2374_s4 + $0x1c0] sm:$0xff] }
 0x1d2   :  { %v769_v62 = vpop.f32.mrf.mxu1 }
 0x1d8   :  { %v816_v63 = vpop.f32.mrf.mxu2 }
 0x1d9   :  { %v877_v23 = vpop.f32.mrf.mxu3  ;;  %v817_v25 = vadd.f32 %v816_v63, %v769_v62 }
 0x1da   :  { %v772_v0 = vpop.f32.mrf.mxu1 }
 0x1db   :  { %v888_v32 = vadd.f32 %v877_v23, %v817_v25  ;;  %v1167_v25 = vld [vmem:[%s2374_s4 + $0x58] sm:$0xff] }
 0x1e0   :  { %v819_v1 = vpop.f32.mrf.mxu2 }
 0x1e1   :  { %v820_v38 = vadd.f32 %v819_v1, %v772_v0  ;;  %v880_v40 = vpop.f32.mrf.mxu3  ;;  %v1068_v1 = vld [vmem:[%s2373_s3 + $0x8] sm:$0xff] }
 0x1e2   :  { %v2003_v2 = vpop.f32.mrf.mxu1  ;;  %1136 = vmatpush.msrb.mxu3 %v1068_v1  ;;  %v1240_v1 = vld [vmem:[%s2374_s4 + $0x140] sm:$0xff] }
 0x1e3   :  { %v889_v46 = vadd.f32 %v880_v40, %v820_v38  ;;  %v1161_v38 = vld [vmem:[%s2374_s4 + $0x28] sm:$0xff] }
 0x1e8   :  { %v2005_v4 = vpop.f32.mrf.mxu2 }
 0x1e9   :  { %v823_v55 = vadd.f32 %v2005_v4, %v2003_v2  ;;  %v883_v61 = vpop.f32.mrf.mxu3  ;;  %v1067_v4 = vld [vmem:[%s2373_s3] sm:$0xff] }
 0x1ea   :  { %v937_v6 = vpop.f32.mrf.mxu1  ;;  %1137 = vmatpush.msrb.mxu3 %v1067_v4  ;;  %v1239_v4 = vld [vmem:[%s2374_s4 + $0x138] sm:$0xff] }
 0x1eb   :  { %v952_v11 = vadd.f32 %v937_v6, %v886_v9  ;;  %v890_v63 = vadd.f32 %v883_v61, %v823_v55  ;;  %v1156_v55 = vld [vmem:[%s2374_s4] sm:$0xff]  ;;  %v1324_v61 = vld [vmem:[%s2374_s4 + $0x270] sm:$0xff] }
 0x1f0   :  { %v1003_v14 = vpop.f32.mrf.mxu2 }
 0x1f1   :  { %v1018_v16 = vadd.f32 %v1003_v14, %v952_v11  ;;  %v1189_v14 = vld [vmem:[%s2374_s4 + $0xf8] sm:$0xff] }
 0x1f2   :  { %v940_v17 = vpop.f32.mrf.mxu1  ;;  %1190 = vmatpush.msrb.mxu1 %v1189_v14  ;;  %v1236_v14 = vld [vmem:[%s2374_s4 + $0x120] sm:$0xff] }
 0x1f3   :  { %v1025_v18 = vadd.f32 %v2019_v12, %v1018_v16  ;;  %v953_v22 = vadd.f32 %v940_v17, %v887_v19  ;;  %v1170_v16 = vld [vmem:[%s2374_s4 + $0x70] sm:$0xff]  ;;  %v1187_v17 = vld [vmem:[%s2374_s4 + $0xe8] sm:$0xff]  ;;  %v1186_v19 = vld [vmem:[%s2374_s4 + $0xe0] sm:$0xff] }
 0x1f4   :  { %1211 = vmatpush.msrb.mxu2 %v1170_v16  ;;  %v1235_v16 = vld [vmem:[%s2374_s4 + $0x118] sm:$0xff] }
 0x1f5   :  { %v1030_v20 = vmul.f32 0.01, %v1025_v18 }
 0x1f7   :  { %v1035_v21 = vmax.f32 %v1025_v18, %v1030_v20  ;;  %v1169_v18 = vld [vmem:[%s2374_s4 + $0x68] sm:$0xff]  ;;  %v1168_v20 = vld [vmem:[%s2374_s4 + $0x60] sm:$0xff] }
 0x1f8   :  { %v1006_v24 = vpop.f32.mrf.mxu2  ;;  %1212 = vmatpush.msrb.mxu2 %v1169_v18  ;;  %v1317_v18 = vld [vmem:[%s2374_s4 + $0x238] sm:$0xff] }
 0x1f9   :  { %1041 = vst.msk [vmem:[#allocation4] sm:$0xff] %vm1040_vm3, %v1035_v21  ;;  %v1019_v26 = vadd.f32 %v1006_v24, %v953_v22  ;;  %v1185_v24 = vld [vmem:[%s2374_s4 + $0xd8] sm:$0xff] }
 0x1fa   :  { %v943_v27 = vpop.f32.mrf.mxu1  ;;  %1213 = vmatpush.msrb.mxu2 %v1168_v20  ;;  %v1277_v20 = vld [vmem:[%s2374_s4 + $0x1b0] sm:$0xff] }
 0x1fb   :  { %v1026_v29 = vadd.f32 %v2019_v12, %v1019_v26  ;;  %v954_v35 = vadd.f32 %v943_v27, %v888_v32  ;;  %v1184_v27 = vld [vmem:[%s2374_s4 + $0xd0] sm:$0xff]  ;;  %v1164_v32 = vld [vmem:[%s2374_s4 + $0x40] sm:$0xff] }
 0x1fc   :  { %1214 = vmatpush.msrb.mxu2 %v1167_v25 }
 0x1fd   :  { %v1031_v33 = vmul.f32 0.01, %v1026_v29 }
 0x1fe   :  { %1215 = vmatpush.msrb.mxu2 %v1166_v28  ;;  %v1314_v28 = vld [vmem:[%s2374_s4 + $0x220] sm:$0xff] }
 0x1ff   :  { %v1036_v45 = vmax.f32 %v1026_v29, %v1031_v33  ;;  %v1183_v29 = vld [vmem:[%s2374_s4 + $0xc8] sm:$0xff]  ;;  %v1181_v33 = vld [vmem:[%s2374_s4 + $0xb8] sm:$0xff] }
 0x200   :  { %v1009_v36 = vpop.f32.mrf.mxu2  ;;  %1216 = vmatpush.msrb.mxu2 %v1165_v30  ;;  %v1313_v30 = vld [vmem:[%s2374_s4 + $0x218] sm:$0xff] }
 0x201   :  { %1042 = vst.msk [vmem:[#allocation4 + $0x8] sm:$0xff] %vm1040_vm3, %v1036_v45  ;;  %v1020_v39 = vadd.f32 %v1009_v36, %v954_v35  ;;  %v1180_v35 = vld [vmem:[%s2374_s4 + $0xb0] sm:$0xff] }
 0x202   :  { %v946_v41 = vpop.f32.mrf.mxu1  ;;  %1217 = vmatpush.msrb.mxu2 %v1164_v32  ;;  %v1162_v36 = vld [vmem:[%s2374_s4 + $0x30] sm:$0xff] }
 0x203   :  { %v1027_v42 = vadd.f32 %v2019_v12, %v1020_v39  ;;  %v955_v50 = vadd.f32 %v946_v41, %v889_v46  ;;  %v1178_v41 = vld [vmem:[%s2374_s4 + $0xa0] sm:$0xff]  ;;  %v1159_v46 = vld [vmem:[%s2374_s4 + $0x18] sm:$0xff]  ;;  %v1312_v32 = vld [vmem:[%s2374_s4 + $0x210] sm:$0xff] }
 0x204   :  { %1218 = vmatpush.msrb.mxu2 %v1163_v34  ;;  %v1311_v34 = vld [vmem:[%s2374_s4 + $0x208] sm:$0xff] }
 0x205   :  { %v1032_v47 = vmul.f32 0.01, %v1027_v42 }
 0x206   :  { %1219 = vmatpush.msrb.mxu2 %v1162_v36 }
 0x207   :  { %v1037_v49 = vmax.f32 %v1027_v42, %v1032_v47  ;;  %v1160_v42 = vld [vmem:[%s2374_s4 + $0x20] sm:$0xff]  ;;  %v1246_v47 = vld [vmem:[%s2374_s4 + $0x170] sm:$0xff] }
 0x208   :  { %v1046_v52 = vld [vmem:[#allocation4] ss:$2 sm:$0xff]  ;;  %v1052_v53 = vld [vmem:[#allocation4 + $0x1] ss:$2 sm:$0xff]  ;;  %v1012_v54 = vpop.f32.mrf.mxu2  ;;  %1220 = vmatpush.msrb.mxu2 %v1161_v38 }
 0x209   :  { %v1057_v56 = vmax.f32 %v1046_v52, %v1052_v53  ;;  %1043 = vst.msk [vmem:[#allocation4 + $0x10] sm:$0xff] %vm1040_vm3, %v1037_v49  ;;  %v1021_v57 = vadd.f32 %v1012_v54, %v955_v50  ;;  %v1158_v49 = vld [vmem:[%s2374_s4 + $0x10] sm:$0xff]  ;;  %v1245_v50 = vld [vmem:[%s2374_s4 + $0x168] sm:$0xff]  ;;  %v1244_v53 = vld [vmem:[%s2374_s4 + $0x160] sm:$0xff] }
 0x20a   :  { %v949_v62 = vpop.f32.mrf.mxu1  ;;  %1221 = vmatpush.msrb.mxu2 %v1160_v42  ;;  %v1157_v52 = vld [vmem:[%s2374_s4 + $0x8] sm:$0xff]  ;;  %v1174_v54 = vld [vmem:[%s2374_s4 + $0x80] sm:$0xff] }
 0x20b   :  { %1060 = vst.msk [vmem:[#allocation5] sm:$0xff] %vm1040_vm3, %v1057_v56  ;;  %v1028_v58 = vadd.f32 %v2019_v12, %v1021_v57  ;;  %v956_v3 = vadd.f32 %v949_v62, %v890_v63  ;;  %v1243_v56 = vld [vmem:[%s2374_s4 + $0x158] sm:$0xff]  ;;  %v1284_v62 = vld [vmem:[%s2374_s4 + $0x1e8] sm:$0xff]  ;;  %v1505_v38 = vld [vmem:[%s2376_s6 + $0x2] ss:$0 sm:$0xff] }
 0x20c   :  { %1222 = vmatpush.msrb.mxu2 %v1159_v46  ;;  %v1286_v57 = vld [vmem:[%s2374_s4 + $0x1f8] sm:$0xff]  ;;  %v1241_v63 = vld [vmem:[%s2374_s4 + $0x148] sm:$0xff] }
 0x20d   :  { %v1033_v0 = vmul.f32 0.01, %v1028_v58 }
 0x20e   :  { %1223 = vmatpush.msrb.mxu2 %v1158_v49 }
 0x20f   :  { %v1038_v2 = vmax.f32 %v1028_v58, %v1033_v0  ;;  %v1325_v58 = vld [vmem:[%s2374_s4 + $0x278] sm:$0xff]  ;;  %v1323_v0 = vld [vmem:[%s2374_s4 + $0x268] sm:$0xff] }
 0x210   :  { %v1015_v5 = vpop.f32.mrf.mxu2  ;;  %1224 = vmatpush.msrb.mxu2 %v1157_v52 }
 0x211   :  { %1044 = vst.msk [vmem:[#allocation4 + $0x18] sm:$0xff] %vm1040_vm3, %v1038_v2  ;;  %v1022_v6 = vadd.f32 %v1015_v5, %v956_v3  ;;  %v1283_v2 = vld [vmem:[%s2374_s4 + $0x1e0] sm:$0xff]  ;;  %v1282_v5 = vld [vmem:[%s2374_s4 + $0x1d8] sm:$0xff] }
 0x212   :  { %1225 = vmatpush.msrb.mxu2 %v1156_v55  ;;  %v1322_v3 = vld [vmem:[%s2374_s4 + $0x260] sm:$0xff]  ;;  %v1363_v55 = vld [vmem:[%s2375_s5 + $0x58] sm:$0xff] }
 0x213   :  { %v1029_v7 = vadd.f32 %v2019_v12, %v1022_v6  ;;  %v1188_v12 = vld [vmem:[%s2374_s4 + $0xf0] sm:$0xff]  ;;  %v1321_v6 = vld [vmem:[%s2374_s4 + $0x258] sm:$0xff] }
 0x214   :  { %1191 = vmatpush.msrb.mxu1 %v1188_v12  ;;  %1326 = vmatpush.msra.mxu2 %v1325_v58  ;;  %v1318_v12 = vld [vmem:[%s2374_s4 + $0x240] sm:$0xff] }
 0x215   :  { %v1034_v8 = vmul.f32 0.01, %v1029_v7  ;;  %v1360_v58 = vld [vmem:[%s2375_s5 + $0x40] sm:$0xff] }
 0x216   :  { %1192 = vmatpush.msrb.mxu1 %v1187_v17  ;;  %1327 = vmatpush.msra.mxu2 %v1324_v61  ;;  %v1278_v17 = vld [vmem:[%s2374_s4 + $0x1b8] sm:$0xff]  ;;  %v1357_v61 = vld [vmem:[%s2375_s5 + $0x28] sm:$0xff] }
 0x217   :  { %v1039_v9 = vmax.f32 %v1029_v7, %v1034_v8  ;;  %v1238_v7 = vld [vmem:[%s2374_s4 + $0x130] sm:$0xff] }
 0x218   :  { %v1048_v10 = vld [vmem:[#allocation4 + $0x10] ss:$2 sm:$0xff]  ;;  %v1054_v11 = vld [vmem:[#allocation4 + $0x11] ss:$2 sm:$0xff]  ;;  %1193 = vmatpush.msrb.mxu1 %v1186_v19  ;;  %1328 = vmatpush.msra.mxu2 %v1323_v0 }
 0x219   :  { %v1058_v13 = vmax.f32 %v1048_v10, %v1054_v11  ;;  %1045 = vst.msk [vmem:[#allocation4 + $0x20] sm:$0xff] %vm1040_vm3, %v1039_v9  ;;  %v1281_v8 = vld [vmem:[%s2374_s4 + $0x1d0] sm:$0xff]  ;;  %v1237_v10 = vld [vmem:[%s2374_s4 + $0x128] sm:$0xff] }
 0x21a   :  { %1194 = vmatpush.msrb.mxu1 %v1185_v24  ;;  %1329 = vmatpush.msra.mxu2 %v1322_v3  ;;  %v1320_v9 = vld [vmem:[%s2374_s4 + $0x250] sm:$0xff]  ;;  %v1280_v11 = vld [vmem:[%s2374_s4 + $0x1c8] sm:$0xff] }
 0x21b   :  { %1061 = vst.msk [vmem:[#allocation5 + $0x8] sm:$0xff] %vm1040_vm3, %v1058_v13  ;;  %v1319_v13 = vld [vmem:[%s2374_s4 + $0x248] sm:$0xff]  ;;  %v1234_v19 = vld [vmem:[%s2374_s4 + $0x110] sm:$0xff] }
 0x21c   :  { %1195 = vmatpush.msrb.mxu1 %v1184_v27  ;;  %1330 = vmatpush.msra.mxu2 %v1321_v6  ;;  %v1315_v24 = vld [vmem:[%s2374_s4 + $0x228] sm:$0xff]  ;;  %v1275_v27 = vld [vmem:[%s2374_s4 + $0x1a0] sm:$0xff]  ;;  %v1354_v0 = vld [vmem:[%s2375_s5 + $0x10] sm:$0xff] }
 0x21e   :  { %1196 = vmatpush.msrb.mxu1 %v1183_v29  ;;  %1331 = vmatpush.msra.mxu2 %v1320_v9  ;;  %v1274_v29 = vld [vmem:[%s2374_s4 + $0x198] sm:$0xff] }
 0x220   :  { %v1050_v21 = vld [vmem:[#allocation4 + $0x20] ss:$2 sm:$0xf]  ;;  %v1056_v22 = vld [vmem:[#allocation4 + $0x21] ss:$2 sm:$0xf]  ;;  %1197 = vmatpush.msrb.mxu1 %v1182_v31  ;;  %1332 = vmatpush.msra.mxu2 %v1319_v13 }
 0x221   :  { %v1059_v23 = vmax.f32 %v1050_v21, %v1056_v22  ;;  %v1316_v21 = vld [vmem:[%s2374_s4 + $0x230] sm:$0xff]  ;;  %v1233_v22 = vld [vmem:[%s2374_s4 + $0x108] sm:$0xff] }
 0x222   :  { %v1076_v26 = vld [vmem:[#allocation5 + $0x1] ss:$2 sm:$0xff]  ;;  %1198 = vmatpush.msrb.mxu1 %v1181_v33  ;;  %v1064_v39 = vld [vmem:[#allocation5] ss:$2 sm:$0xff]  ;;  %1333 = vmatpush.msra.mxu2 %v1318_v12  ;;  %v1273_v31 = vld [vmem:[%s2374_s4 + $0x190] sm:$0xff] }
 0x223   :  { %1487 = vmatmul.msk.f32.vlgmr.msra.gmra.mxu3 %vm1040_vm3, %v1076_v26  ;;  %1063 = vst.msk [vmem:[#allocation5 + $0x10] sm:$0xf] %vm1062_vm4, %v1059_v23  ;;  %v1276_v23 = vld [vmem:[%s2374_s4 + $0x1a8] sm:$0xff]  ;;  %v1232_v26 = vld [vmem:[%s2374_s4 + $0x100] sm:$0xff] }
 0x224   :  { %1199 = vmatpush.msrb.mxu1 %v1180_v35  ;;  %1248 = vmatpush.msra.mxu3 %v1247_v43  ;;  %v1272_v33 = vld [vmem:[%s2374_s4 + $0x188] sm:$0xff]  ;;  %v1310_v35 = vld [vmem:[%s2374_s4 + $0x200] sm:$0xff] }
 0x225   :  { %1334 = vmatpush.msra.mxu2 %v1317_v18 }
 0x226   :  { %1200 = vmatpush.msrb.mxu1 %v1179_v37  ;;  %1249 = vmatpush.msra.mxu3 %v1246_v47  ;;  %v1364_v37 = vld [vmem:[%s2375_s5 + $0x60] sm:$0xf] }
 0x227   :  { %1335 = vmatpush.msra.mxu2 %v1316_v21 }
 0x228   :  { %1201 = vmatpush.msrb.mxu1 %v1178_v41  ;;  %1250 = vmatpush.msra.mxu3 %v1245_v50 }
 0x229   :  { %1336 = vmatpush.msra.mxu2 %v1315_v24 }
 0x22a   :  { %v1078_v45 = vld [vmem:[#allocation5 + $0x11] ss:$2 sm:$0x3]  ;;  %v1066_v40 = vld [vmem:[#allocation5 + $0x10] ss:$2 sm:$0x3]  ;;  %1202 = vmatpush.msrb.mxu1 %v1177_v44  ;;  %1251 = vmatpush.msra.mxu3 %v1244_v53 }
 0x22b   :  { %1488 = vmatmul.msk.f32.gmra.mxu3 %vm1040_vm3, %v1078_v45  ;;  %1337 = vmatpush.msra.mxu2 %v1314_v28  ;;  %v1271_v45 = vld [vmem:[%s2374_s4 + $0x180] sm:$0xff]  ;;  %s1400_s4 = sshll.u32 %s1534_s10, 4  ;;  %s1401_s4 = int_to_ptr.vmem [resolvable:$true] %s1400_s4 }
 0x22c   :  { %1203 = vmatpush.msrb.mxu1 %v1176_v48  ;;  %1252 = vmatpush.msra.mxu3 %v1243_v56  ;;  %v1362_v56 = vld [vmem:[%s2375_s5 + $0x50] sm:$0xff] }
 0x22d   :  { %1338 = vmatpush.msra.mxu2 %v1313_v30 }
 0x22e   :  { %1204 = vmatpush.msrb.mxu1 %v1175_v51  ;;  %1253 = vmatpush.msra.mxu3 %v1242_v59  ;;  %v1359_v59 = vld [vmem:[%s2375_s5 + $0x38] sm:$0xff] }
 0x22f   :  { %1339 = vmatpush.msra.mxu2 %v1312_v32 }
 0x230   :  { %1205 = vmatpush.msrb.mxu1 %v1174_v54  ;;  %1254 = vmatpush.msra.mxu3 %v1241_v63  ;;  %v1355_v63 = vld [vmem:[%s2375_s5 + $0x18] sm:$0xff] }
 0x231   :  { %1340 = vmatpush.msra.mxu2 %v1311_v34 }
 0x232   :  { %1287 = vmatpush.msra.mxu1 %v1286_v57  ;;  %1255 = vmatpush.msra.mxu3 %v1240_v1  ;;  %v1361_v57 = vld [vmem:[%s2375_s5 + $0x48] sm:$0xff] }
 0x233   :  { %1489 = vmatmul.msk.f32.vlgmr.msrb.gmra.mxu3 %vm1040_vm3, %v1064_v39  ;;  %1341 = vmatpush.msra.mxu2 %v1310_v35  ;;  %v1353_v1 = vld [vmem:[%s2375_s5 + $0x8] sm:$0xff] }
 0x234   :  { %1288 = vmatpush.msra.mxu1 %v1285_v60  ;;  %1256 = vmatpush.msra.mxu3 %v1239_v4  ;;  %v1358_v60 = vld [vmem:[%s2375_s5 + $0x30] sm:$0xff] }
 0x236   :  { %1289 = vmatpush.msra.mxu1 %v1284_v62  ;;  %1257 = vmatpush.msra.mxu3 %v1238_v7  ;;  %v1356_v62 = vld [vmem:[%s2375_s5 + $0x20] sm:$0xff] }
 0x238   :  { %1290 = vmatpush.msra.mxu1 %v1283_v2  ;;  %1258 = vmatpush.msra.mxu3 %v1237_v10  ;;  %v1352_v2 = vld [vmem:[%s2375_s5] sm:$0xff] }
 0x239   :  { %v1506_v10 = vld [vmem:[%s2376_s6 + $0x3] ss:$0 sm:$0xff] }
 0x23a   :  { %1291 = vmatpush.msra.mxu1 %v1282_v5  ;;  %1259 = vmatpush.msra.mxu3 %v1236_v14 }
 0x23b   :  { %1490 = vmatmul.msk.f32.gmra.mxu3 %vm1040_vm3, %v1066_v40 }
 0x23c   :  { %1292 = vmatpush.msra.mxu1 %v1281_v8  ;;  %1260 = vmatpush.msra.mxu3 %v1235_v16  ;;  %v1507_v16 = vld [vmem:[%s2376_s6 + $0x4] ss:$0 sm:$0xff] }
 0x23e   :  { %1293 = vmatpush.msra.mxu1 %v1280_v11  ;;  %1261 = vmatpush.msra.mxu3 %v1234_v19 }
 0x240   :  { %1294 = vmatpush.msra.mxu1 %v1279_v15  ;;  %1262 = vmatpush.msra.mxu3 %v1233_v22 }
 0x242   :  { %1295 = vmatpush.msra.mxu1 %v1278_v17  ;;  %1263 = vmatpush.msra.mxu3 %v1232_v26 }
 0x244   :  { %1296 = vmatpush.msra.mxu1 %v1277_v20  ;;  %1491 = vmatpush.msk.msrb.mxu3 %vm233_vm0, %v1364_v37 }
 0x246   :  { %1297 = vmatpush.msra.mxu1 %v1276_v23  ;;  %1378 = vmatpush.msrb.mxu3 %v1363_v55 }
 0x248   :  { %1298 = vmatpush.msra.mxu1 %v1275_v27  ;;  %1379 = vmatpush.msrb.mxu3 %v1362_v56 }
 0x24a   :  { %1299 = vmatpush.msra.mxu1 %v1274_v29  ;;  %1380 = vmatpush.msrb.mxu3 %v1361_v57 }
 0x24c   :  { %1300 = vmatpush.msra.mxu1 %v1273_v31  ;;  %1381 = vmatpush.msrb.mxu3 %v1360_v58 }
 0x24e   :  { %1301 = vmatpush.msra.mxu1 %v1272_v33  ;;  %1382 = vmatpush.msrb.mxu3 %v1359_v59 }
 0x250   :  { %1302 = vmatpush.msra.mxu1 %v1271_v45  ;;  %1383 = vmatpush.msrb.mxu3 %v1358_v60 }
 0x252   :  { %1384 = vmatpush.msrb.mxu3 %v1357_v61 }
 0x254   :  { %1385 = vmatpush.msrb.mxu3 %v1356_v62 }
 0x256   :  { %1386 = vmatpush.msrb.mxu3 %v1355_v63 }
 0x258   :  { %1387 = vmatpush.msrb.mxu3 %v1354_v0 }
 0x25a   :  { %1388 = vmatpush.msrb.mxu3 %v1353_v1 }
 0x25c   :  { %1389 = vmatpush.msrb.mxu3 %v1352_v2 }
 0x2a6   :  { %v1110_v25 = vpop.f32.mrf.mxu3 }
 0x2ae   :  { %v1113_v36 = vpop.f32.mrf.mxu3 }
 0x2b6   :  { %v1139_v39 = vpop.f32.mrf.mxu3 }
 0x2b7   :  { %v1140_v40 = vadd.f32 %v1139_v39, %v1110_v25 }
 0x2b9   :  { %v1147_v41 = vadd.f32 %v1505_v38, %v1140_v40 }
 0x2bb   :  { %v1149_v42 = vmul.f32 0.01, %v1147_v41 }
 0x2bd   :  { %v1151_v43 = vmax.f32 %v1147_v41, %v1149_v42 }
 0x2be   :  { %v1142_v44 = vpop.f32.mrf.mxu3 }
 0x2bf   :  { %1153 = vst [vmem:[#allocation6] sm:$0xff] %v1151_v43  ;;  %v1143_v46 = vadd.f32 %v1142_v44, %v1113_v36 }
 0x2c1   :  { %v1148_v47 = vadd.f32 %v1505_v38, %v1143_v46 }
 0x2c3   :  { %v1150_v48 = vmul.f32 0.01, %v1148_v47 }
 0x2c5   :  { %v1152_v49 = vmax.f32 %v1148_v47, %v1150_v48 }
 0x2c6   :  { %v1173_v50 = vld [vmem:[#allocation6 + $0x1] ss:$5 sm:$0x3]  ;;  %v1155_v51 = vld [vmem:[#allocation6] ss:$5 sm:$0x3] }
 0x2c7   :  { %1154 = vst [vmem:[#allocation6 + $0x8] sm:$0x3] %v1152_v49  ;;  %1206 = vmatmul.f32.vlgmr.msrb.gmra.mxu1 %v1173_v50  ;;  %1226 = vmatmul.f32.vlgmr.msrb.gmra.mxu2 %v1155_v51  ;;  %v1231_v52 = vld [vmem:[#allocation6 + $0x2] ss:$5 sm:$0x3] }
 0x2c8   :  { %1264 = vmatmul.f32.vlgmr.msra.gmra.mxu3 %v1231_v52 }
 0x2ce   :  { %v1270_v53 = vld [vmem:[#allocation6 + $0x3] ss:$5 sm:$0x3]  ;;  %v1309_v54 = vld [vmem:[#allocation6 + $0x4] ss:$5 sm:$0x3] }
 0x2cf   :  { %1303 = vmatmul.f32.vlgmr.msra.gmra.mxu1 %v1270_v53  ;;  %1342 = vmatmul.f32.vlgmr.msra.gmra.mxu2 %v1309_v54 }
 0x344   :  { %v1207_v3 = vpop.f32.mrf.mxu1 }
 0x34a   :  { %v1227_v4 = vpop.f32.mrf.mxu2 }
 0x34b   :  { %v1228_v5 = vadd.f32 %v1227_v4, %v1207_v3  ;;  %v1265_v6 = vpop.f32.mrf.mxu3 }
 0x34c   :  { %v1304_v8 = vpop.f32.mrf.mxu1 }
 0x34d   :  { %v1268_v7 = vadd.f32 %v1265_v6, %v1228_v5 }
 0x34f   :  { %v1307_v9 = vadd.f32 %v1304_v8, %v1268_v7 }
 0x352   :  { %v1343_v11 = vpop.f32.mrf.mxu2 }
 0x353   :  { %v1346_v13 = vadd.f32 %v1343_v11, %v1307_v9 }
 0x355   :  { %v1349_v14 = vadd.f32 %v1506_v10, %v1346_v13 }
 0x357   :  { %v1350_v15 = vmul.f32 0.01, %v1349_v14 }
 0x359   :  { %v1351_v12 = vmax.f32 %v1349_v14, %v1350_v15 }
 0x35b   :  { %1492 = vmatmul.msk.f32.vlgmr.msrb.gmra.mxu3 %vm1367_vm5, %v1351_v12 }
 0x3de   :  { %v1391_v17 = vpop.f32.mrf.mxu3 }
 0x3df   :  { %v1392_v18 = vadd.f32 %v1507_v16, %v1391_v17 }
 0x3e1   :  { %1394 = vst [vmem:[#allocation7] sm:$0x3] %v1392_v18 }
 0x3e2   :  { %1405 = dma.vmem_to_hbm [thread:$0]  %s1401_s4, 32, %s1403_s12, [#allocation8]  }
 0x3e3   :  { %1532 = dma.done.wait [#allocation8], 32  }
 0x3e4   :  { %1533 = vsyncadd [#allocation8], 4294967264 }
 0x3e5   :  { %1410 = vsyncpa [#allocation8], 1 }

</bundles_post_ra>
